<compile_context>
chip_gen: v7x
topology: tpu7x:2x2x1
jax: 0.10.0
libtpu: 0.0.40
codegen_flags: <defaults>
</compile_context>

<pallas_src>
import jax
import jax.numpy as jnp
from jax.experimental import pallas as pl
from jax.experimental.pallas import tpu as pltpu

HIDDEN_SIZE = 32
NUM_LAYERS = 2
INPUT_SIZE = 4    # [x, y, t, phi]
OUT_SIZE = 3      # [u, v, p]
TILE_N_MAX = 2048  # points per grid step (multiple of 256)
LANE_ALIGN = 256


def _lstm_pinn_kernel(x_ref, *refs):
    """Feature-major single-step LSTM stack + linear head.

    x_ref   : (4, TILE_N)   rows are [x; y; t; phi] for this point tile
    per layer l: W_l (3H, in_dim_l), b_l (3H, 1)   (forget gate pruned, c0==0)
    W_fc    : (3, H), b_fc : (3, 1)
    out_ref : (3, TILE_N)   rows are [u; v; p]
    """
    out_ref = refs[-1]
    param_refs = refs[:-1]
    n_layers = (len(param_refs) - 2) // 2

    h = x_ref[...]
    for l in range(n_layers):
        w = param_refs[2 * l][...]
        b = param_refs[2 * l + 1][...]
        gates = jnp.dot(w, h, preferred_element_type=jnp.float32) + b  # (3H, T)
        hd = gates.shape[0] // 3
        i_g = jax.nn.sigmoid(gates[0 * hd:1 * hd, :])
        g_g = jnp.tanh(gates[1 * hd:2 * hd, :])
        o_g = jax.nn.sigmoid(gates[2 * hd:3 * hd, :])
        # c0 == 0  =>  c = i*g (forget-gate term removed in the wrapper).
        h = o_g * jnp.tanh(i_g * g_g)

    w_fc = param_refs[2 * n_layers][...]
    b_fc = param_refs[2 * n_layers + 1][...]
    out_ref[...] = (jnp.dot(w_fc, h, preferred_element_type=jnp.float32)
                    + b_fc).astype(out_ref.dtype)


def lstm_pinn_ns2d_forward(x, y, t, phi, params):
    """Pallas implementation of LSTM_PINN_NS2D.forward.

    params: dict with keys
      'w_ih': list of L arrays, layer l has shape (4*H, in_dim_l)  (torch layout)
      'b_ih': list of L arrays (4*H,)
      'b_hh': list of L arrays (4*H,)
      'w_fc': (3, H), 'b_fc': (3,)
    Returns (u, v, p), each (N, 1) float32.
    """
    hdim = params['w_ih'][0].shape[0] // 4
    n_layers = len(params['w_ih'])

    # Feature-major glue in plain JAX: (4, N) with rows [x, y, t, phi].
    feats = jnp.stack(
        [jnp.reshape(a, (-1,)).astype(jnp.float32) for a in (x, y, t, phi)],
        axis=0)                                                     # (4, N)
    n = feats.shape[1]

    # Lane-aligned point tile: multiple of 256, capped at TILE_N_MAX.
    tile_n = min(TILE_N_MAX, max(LANE_ALIGN, -(-n // LANE_ALIGN) * LANE_ALIGN))
    n_pad = -(-n // tile_n) * tile_n
    feats_p = jnp.pad(feats, ((0, 0), (0, n_pad - n)))

    def prune_f_rows(a):
        # torch gate order along dim 0 is (i, f, g, o); drop f (c0 == 0).
        return jnp.concatenate(
            [a[0:hdim], a[2 * hdim:3 * hdim], a[3 * hdim:4 * hdim]], axis=0)

    flat_params = []
    in_specs = [pl.BlockSpec((INPUT_SIZE, tile_n), lambda i: (0, i))]
    for l in range(n_layers):
        w = prune_f_rows(jnp.asarray(params['w_ih'][l], jnp.float32))   # (3H, in)
        b = prune_f_rows(
            jnp.asarray(params['b_ih'][l], jnp.float32)
            + jnp.asarray(params['b_hh'][l], jnp.float32))[:, None]     # (3H, 1)
        flat_params += [w, b]
        in_specs += [
            pl.BlockSpec(w.shape, lambda i: (0, 0)),
            pl.BlockSpec(b.shape, lambda i: (0, 0)),
        ]
    w_fc = jnp.asarray(params['w_fc'], jnp.float32)                     # (3, H)
    b_fc = jnp.asarray(params['b_fc'], jnp.float32)[:, None]            # (3, 1)
    flat_params += [w_fc, b_fc]
    in_specs += [
        pl.BlockSpec(w_fc.shape, lambda i: (0, 0)),
        pl.BlockSpec(b_fc.shape, lambda i: (0, 0)),
    ]

    grid = (n_pad // tile_n,)
    uvp_fm = pl.pallas_call(
        _lstm_pinn_kernel,
        out_shape=jax.ShapeDtypeStruct((OUT_SIZE, n_pad), jnp.float32),
        grid_spec=pltpu.PrefetchScalarGridSpec(
            num_scalar_prefetch=0,
            grid=grid,
            in_specs=in_specs,
            out_specs=pl.BlockSpec((OUT_SIZE, tile_n), lambda i: (0, i)),
        ),
        compiler_params=pltpu.CompilerParams(
            dimension_semantics=("parallel",),
            vmem_limit_bytes=32 * 1024 * 1024),
    )(feats_p, *flat_params)

    u = uvp_fm[0, :n][:, None]
    v = uvp_fm[1, :n][:, None]
    p = uvp_fm[2, :n][:, None]
    return u, v, p


def _reference_forward(x, y, t, phi, params):
    """Plain-JAX reference (full PyTorch LSTM math for seq_len=1, h0=c0=0)."""
    seq = jnp.concatenate(
        [jnp.reshape(a, (-1, 1)).astype(jnp.float32) for a in (x, y, t, phi)],
        axis=-1)
    h = seq
    for l in range(len(params['w_ih'])):
        gates = h @ params['w_ih'][l].T + params['b_ih'][l] + params['b_hh'][l]
        hdim = gates.shape[-1] // 4
        i_g = jax.nn.sigmoid(gates[:, 0 * hdim:1 * hdim])
        f_g = jax.nn.sigmoid(gates[:, 1 * hdim:2 * hdim])
        g_g = jnp.tanh(gates[:, 2 * hdim:3 * hdim])
        o_g = jax.nn.sigmoid(gates[:, 3 * hdim:4 * hdim])
        c = f_g * 0.0 + i_g * g_g    # c0 == 0
        h = o_g * jnp.tanh(c)
    uvp = h @ params['w_fc'].T + params['b_fc']
    return uvp[:, 0:1], uvp[:, 1:2], uvp[:, 2:3]


def _init_params(key, hidden_size, num_layers):
    """Deterministic init matching PyTorch shapes (uniform(-1/sqrt(H), 1/sqrt(H)))."""
    bound = 1.0 / jnp.sqrt(jnp.float32(hidden_size))
    keys = jax.random.split(key, 4 * num_layers + 2)
    params = {'w_ih': [], 'b_ih': [], 'b_hh': []}
    ki = 0
    for l in range(num_layers):
        in_dim = INPUT_SIZE if l == 0 else hidden_size
        params['w_ih'].append(jax.random.uniform(
            keys[ki], (4 * hidden_size, in_dim), jnp.float32, -bound, bound)); ki += 1
        # W_hh exists in the PyTorch module but multiplies h0 == 0 here, so it
        # has no effect on the forward output; we skip materializing it.
        params['b_ih'].append(jax.random.uniform(
            keys[ki], (4 * hidden_size,), jnp.float32, -bound, bound)); ki += 1
        params['b_hh'].append(jax.random.uniform(
            keys[ki], (4 * hidden_size,), jnp.float32, -bound, bound)); ki += 1
        ki += 1  # reserved (would be the W_hh key)
    params['w_fc'] = jax.random.uniform(
        keys[ki], (OUT_SIZE, hidden_size), jnp.float32, -bound, bound); ki += 1
    params['b_fc'] = jax.random.uniform(
        keys[ki], (OUT_SIZE,), jnp.float32, -bound, bound)
    return params


if __name__ == "__main__":
    key = jax.random.PRNGKey(0)
    k_p, k_x, k_y, k_t, k_phi = jax.random.split(key, 5)

    params = _init_params(k_p, HIDDEN_SIZE, NUM_LAYERS)

    # Small collocation-point batch: 2 x 16 x 16 = 512 points per field.
    shape = (2, 16, 16)
    x = jax.random.normal(k_x, shape, jnp.float32)
    y = jax.random.normal(k_y, shape, jnp.float32)
    t = jax.random.normal(k_t, shape, jnp.float32)
    phi = jax.random.normal(k_phi, shape, jnp.float32)

    u, v, p = lstm_pinn_ns2d_forward(x, y, t, phi, params)
    jax.block_until_ready((u, v, p))

    u_r, v_r, p_r = _reference_forward(x, y, t, phi, params)
    assert u.shape == (512, 1) and v.shape == (512, 1) and p.shape == (512, 1)
    assert jnp.allclose(u, u_r, atol=1e-5, rtol=1e-5)
    assert jnp.allclose(v, v_r, atol=1e-5, rtol=1e-5)
    assert jnp.allclose(p, p_r, atol=1e-5, rtol=1e-5)

    print("KERNEL_OK")
</pallas_src>

<mosaic_0001>
module attributes {stable_mosaic.version = 11 : i64} {
  func.func @_lstm_pinn_kernel(%arg0: i32, %arg1: memref<4x512xf32, #tpu.memory_space<vmem>>, %arg2: memref<96x4xf32, #tpu.memory_space<vmem>>, %arg3: memref<96x1xf32, #tpu.memory_space<vmem>>, %arg4: memref<96x32xf32, #tpu.memory_space<vmem>>, %arg5: memref<96x1xf32, #tpu.memory_space<vmem>>, %arg6: memref<3x32xf32, #tpu.memory_space<vmem>>, %arg7: memref<3x1xf32, #tpu.memory_space<vmem>>, %arg8: memref<3x512xf32, #tpu.memory_space<vmem>>) attributes {dimension_semantics = [#tpu.dimension_semantics<parallel>], iteration_bounds = array<i64: 1>, scalar_prefetch = 0 : i64, scratch_operands = 0 : i64, tpu.core_type = #tpu.core_type<tc>, window_params = [{transform_indices = @transform_0, window_bounds = array<i64: 4, 512>}, {pipeline_mode = #tpu.pipeline_mode<synchronous>, transform_indices = @transform_1, window_bounds = array<i64: 96, 4>}, {pipeline_mode = #tpu.pipeline_mode<synchronous>, transform_indices = @transform_2, window_bounds = array<i64: 96, 1>}, {pipeline_mode = #tpu.pipeline_mode<synchronous>, transform_indices = @transform_3, window_bounds = array<i64: 96, 32>}, {pipeline_mode = #tpu.pipeline_mode<synchronous>, transform_indices = @transform_4, window_bounds = array<i64: 96, 1>}, {pipeline_mode = #tpu.pipeline_mode<synchronous>, transform_indices = @transform_5, window_bounds = array<i64: 3, 32>}, {pipeline_mode = #tpu.pipeline_mode<synchronous>, transform_indices = @transform_6, window_bounds = array<i64: 3, 1>}, {transform_indices = @transform_7, window_bounds = array<i64: 3, 512>}]} {
    %c0 = arith.constant 0 : index
    %c0_0 = arith.constant 0 : index
    %0 = vector.load %arg1[%c0, %c0_0] : memref<4x512xf32, #tpu.memory_space<vmem>>, vector<4x512xf32>
    %c0_1 = arith.constant 0 : index
    %c0_2 = arith.constant 0 : index
    %1 = vector.load %arg2[%c0_1, %c0_2] : memref<96x4xf32, #tpu.memory_space<vmem>>, vector<96x4xf32>
    %c0_3 = arith.constant 0 : index
    %c0_4 = arith.constant 0 : index
    %2 = vector.load %arg3[%c0_3, %c0_4] : memref<96x1xf32, #tpu.memory_space<vmem>>, vector<96x1xf32>
    %cst = arith.constant dense<0.000000e+00> : vector<96x512xf32>
    %3 = tpu.matmul %1, %0, %cst {dimension_numbers = #tpu.dot_dimension_numbers<[1], [0], [0], [1], [0, 0, 1, 1], [], []>} : vector<96x4xf32>, vector<4x512xf32>, vector<96x512xf32> -> vector<96x512xf32>
    %4 = vector.broadcast %2 : vector<96x1xf32> to vector<96x512xf32>
    %5 = arith.addf %3, %4 : vector<96x512xf32>
    %6 = vector.extract_strided_slice %5 {offsets = [0, 0], sizes = [32, 512], strides = [1, 1]} : vector<96x512xf32> to vector<32x512xf32>
    %7 = arith.negf %6 : vector<32x512xf32>
    %8 = math.exp %7 : vector<32x512xf32>
    %cst_5 = arith.constant 1.000000e+00 : f32
    %9 = vector.broadcast %cst_5 : f32 to vector<32x512xf32>
    %10 = arith.addf %9, %8 : vector<32x512xf32>
    %11 = arith.divf %9, %10 : vector<32x512xf32>
    %12 = vector.extract_strided_slice %5 {offsets = [32, 0], sizes = [32, 512], strides = [1, 1]} : vector<96x512xf32> to vector<32x512xf32>
    %13 = math.tanh %12 : vector<32x512xf32>
    %14 = vector.extract_strided_slice %5 {offsets = [64, 0], sizes = [32, 512], strides = [1, 1]} : vector<96x512xf32> to vector<32x512xf32>
    %15 = arith.negf %14 : vector<32x512xf32>
    %16 = math.exp %15 : vector<32x512xf32>
    %cst_6 = arith.constant 1.000000e+00 : f32
    %17 = vector.broadcast %cst_6 : f32 to vector<32x512xf32>
    %18 = arith.addf %17, %16 : vector<32x512xf32>
    %19 = arith.divf %17, %18 : vector<32x512xf32>
    %20 = arith.mulf %11, %13 : vector<32x512xf32>
    %21 = math.tanh %20 : vector<32x512xf32>
    %22 = arith.mulf %19, %21 : vector<32x512xf32>
    %c0_7 = arith.constant 0 : index
    %c0_8 = arith.constant 0 : index
    %23 = vector.load %arg4[%c0_7, %c0_8] : memref<96x32xf32, #tpu.memory_space<vmem>>, vector<96x32xf32>
    %c0_9 = arith.constant 0 : index
    %c0_10 = arith.constant 0 : index
    %24 = vector.load %arg5[%c0_9, %c0_10] : memref<96x1xf32, #tpu.memory_space<vmem>>, vector<96x1xf32>
    %cst_11 = arith.constant dense<0.000000e+00> : vector<96x512xf32>
    %25 = tpu.matmul %23, %22, %cst_11 {dimension_numbers = #tpu.dot_dimension_numbers<[1], [0], [0], [1], [0, 0, 1, 1], [], []>} : vector<96x32xf32>, vector<32x512xf32>, vector<96x512xf32> -> vector<96x512xf32>
    %26 = vector.broadcast %24 : vector<96x1xf32> to vector<96x512xf32>
    %27 = arith.addf %25, %26 : vector<96x512xf32>
    %28 = vector.extract_strided_slice %27 {offsets = [0, 0], sizes = [32, 512], strides = [1, 1]} : vector<96x512xf32> to vector<32x512xf32>
    %29 = arith.negf %28 : vector<32x512xf32>
    %30 = math.exp %29 : vector<32x512xf32>
    %cst_12 = arith.constant 1.000000e+00 : f32
    %31 = vector.broadcast %cst_12 : f32 to vector<32x512xf32>
    %32 = arith.addf %31, %30 : vector<32x512xf32>
    %33 = arith.divf %31, %32 : vector<32x512xf32>
    %34 = vector.extract_strided_slice %27 {offsets = [32, 0], sizes = [32, 512], strides = [1, 1]} : vector<96x512xf32> to vector<32x512xf32>
    %35 = math.tanh %34 : vector<32x512xf32>
    %36 = vector.extract_strided_slice %27 {offsets = [64, 0], sizes = [32, 512], strides = [1, 1]} : vector<96x512xf32> to vector<32x512xf32>
    %37 = arith.negf %36 : vector<32x512xf32>
    %38 = math.exp %37 : vector<32x512xf32>
    %cst_13 = arith.constant 1.000000e+00 : f32
    %39 = vector.broadcast %cst_13 : f32 to vector<32x512xf32>
    %40 = arith.addf %39, %38 : vector<32x512xf32>
    %41 = arith.divf %39, %40 : vector<32x512xf32>
    %42 = arith.mulf %33, %35 : vector<32x512xf32>
    %43 = math.tanh %42 : vector<32x512xf32>
    %44 = arith.mulf %41, %43 : vector<32x512xf32>
    %c0_14 = arith.constant 0 : index
    %c0_15 = arith.constant 0 : index
    %45 = vector.load %arg6[%c0_14, %c0_15] : memref<3x32xf32, #tpu.memory_space<vmem>>, vector<3x32xf32>
    %c0_16 = arith.constant 0 : index
    %c0_17 = arith.constant 0 : index
    %46 = vector.load %arg7[%c0_16, %c0_17] : memref<3x1xf32, #tpu.memory_space<vmem>>, vector<3x1xf32>
    %cst_18 = arith.constant dense<0.000000e+00> : vector<3x512xf32>
    %47 = tpu.matmul %45, %44, %cst_18 {dimension_numbers = #tpu.dot_dimension_numbers<[1], [0], [0], [1], [0, 0, 1, 1], [], []>} : vector<3x32xf32>, vector<32x512xf32>, vector<3x512xf32> -> vector<3x512xf32>
    %48 = vector.broadcast %46 : vector<3x1xf32> to vector<3x512xf32>
    %49 = arith.addf %47, %48 : vector<3x512xf32>
    %c0_19 = arith.constant 0 : index
    %c0_20 = arith.constant 0 : index
    %50 = vector.load %arg8[%c0_19, %c0_20] : memref<3x512xf32, #tpu.memory_space<vmem>>, vector<3x512xf32>
    tpu.vector_store %arg8[%c0_19, %c0_20], %49 {strides = array<i32>} : memref<3x512xf32, #tpu.memory_space<vmem>>, vector<3x512xf32>,
    return
  }
  func.func @transform_0(%arg0: i32) -> (i32, i32) {
    %c0_i32 = arith.constant 0 : i32
    %c0_i32_0 = arith.constant 0 : i32
    return %c0_i32, %arg0 : i32, i32
  }
  func.func @transform_1(%arg0: i32) -> (i32, i32) {
    %c0_i32 = arith.constant 0 : i32
    %c0_i32_0 = arith.constant 0 : i32
    %c0_i32_1 = arith.constant 0 : i32
    return %c0_i32, %c0_i32_0 : i32, i32
  }
  func.func @transform_2(%arg0: i32) -> (i32, i32) {
    %c0_i32 = arith.constant 0 : i32
    %c0_i32_0 = arith.constant 0 : i32
    %c0_i32_1 = arith.constant 0 : i32
    return %c0_i32, %c0_i32_0 : i32, i32
  }
  func.func @transform_3(%arg0: i32) -> (i32, i32) {
    %c0_i32 = arith.constant 0 : i32
    %c0_i32_0 = arith.constant 0 : i32
    %c0_i32_1 = arith.constant 0 : i32
    return %c0_i32, %c0_i32_0 : i32, i32
  }
  func.func @transform_4(%arg0: i32) -> (i32, i32) {
    %c0_i32 = arith.constant 0 : i32
    %c0_i32_0 = arith.constant 0 : i32
    %c0_i32_1 = arith.constant 0 : i32
    return %c0_i32, %c0_i32_0 : i32, i32
  }
  func.func @transform_5(%arg0: i32) -> (i32, i32) {
    %c0_i32 = arith.constant 0 : i32
    %c0_i32_0 = arith.constant 0 : i32
    %c0_i32_1 = arith.constant 0 : i32
    return %c0_i32, %c0_i32_0 : i32, i32
  }
  func.func @transform_6(%arg0: i32) -> (i32, i32) {
    %c0_i32 = arith.constant 0 : i32
    %c0_i32_0 = arith.constant 0 : i32
    %c0_i32_1 = arith.constant 0 : i32
    return %c0_i32, %c0_i32_0 : i32, i32
  }
  func.func @transform_7(%arg0: i32) -> (i32, i32) {
    %c0_i32 = arith.constant 0 : i32
    %c0_i32_0 = arith.constant 0 : i32
    return %c0_i32, %arg0 : i32, i32
  }
}

</mosaic_0001>

<bundles_post_ra>
// kernel: tpu_custom_call.1
= control target key start
LH: loop header
LB: loop body
LE: loop exit
PB: predicated region body
PF: predicated region fallthrough
CT: control target
= control target key end

     0   :  { %vm154_vm0 = vcmask 1043456   ;;  %v2085_v4 = vmov 0.0   ;;  %vm117_vm1 = vcmask 31744   ;;  %v2086_v6 = vmov 0   ;;  %s2702_s0 = inlined_call_operand.vmem [shape: f32[4,512], index: 0, kind: input, shape index: {}]   ;;  %s2703_s1 = inlined_call_operand.vmem [shape: f32[96,4], index: 1, kind: input, shape index: {}]   ;;  %s2704_s2 = inlined_call_operand.vmem [shape: f32[96,1], index: 2, kind: input, shape index: {}]   ;;  %s2705_s3 = inlined_call_operand.vmem [shape: f32[96,32], index: 3, kind: input, shape index: {}]   ;;  %s2706_s4 = inlined_call_operand.vmem [shape: f32[96,1], index: 4, kind: input, shape index: {}]   ;;  %s2707_s5 = inlined_call_operand.vmem [shape: f32[3,32], index: 5, kind: input, shape index: {}]   ;;  %s2708_s6 = inlined_call_operand.vmem [shape: f32[3,1], index: 6, kind: input, shape index: {}]   ;;  %s2709_s7 = inlined_call_operand.hbm [shape: f32[3,512], index: 7, kind: output, shape index: {}]  }
   0x1   :  { %v27_v0 = vld [vmem:[%s2702_s0] sm:$0xff]  ;;  %v28_v1 = vld [vmem:[%s2702_s0 + $0x8] sm:$0xff]  ;;  %227 = vmatprep.mubr.f32.mxu0 %v2085_v4  ;;  %364 = vmatprep.mubr.f32.mxu1 %v2085_v4  ;;  %v43_v8 = vld [vmem:[%s2704_s2 + $0x10] sm:$0xff] }
   0x2   :  { %v115_v2 = vcombine.high %v27_v0, %v27_v0  ;;  %v116_v3 = vcombine.high %v28_v1, %v28_v1  ;;  %v29_v5 = vld [vmem:[%s2703_s1] sm:$0xff]  ;;  %1673 = vset.pattern.permute.xlu0 %v2086_v6  ;;  %1674 = vset.pattern.permute.xlu1 %v2086_v6  ;;  %v30_v9 = vld [vmem:[%s2703_s1 + $0x8] sm:$0xff]  ;;  %v44_v11 = vld [vmem:[%s2704_s2 + $0x18] sm:$0xff] }
   0x3   :  { %v41_v7 = vld [vmem:[%s2704_s2] sm:$0xff]  ;;  %65 = vperm.xlu1 %1674, %v43_v8   ;;  %v42_v10 = vld [vmem:[%s2704_s2 + $0x8] sm:$0xff]  ;;  %v31_v12 = vld [vmem:[%s2703_s1 + $0x10] sm:$0xff] }
   0x4   :  { %1520 = vmatprep.subr.msk.mxu0 %vm154_vm0, %v115_v2  ;;  %1534 = vmatprep.subr.msk.mxu1 %vm154_vm0, %v116_v3  ;;  %v49_v13 = vld [vmem:[%s2704_s2 + $0x40] sm:$0xff]  ;;  %v50_v14 = vld [vmem:[%s2704_s2 + $0x48] sm:$0xff] }
   0x5   :  { %1521 = vmatpush1.msk.msra.mxu0 %vm154_vm0, %v27_v0  ;;  %1535 = vmatpush1.msk.msra.mxu1 %vm154_vm0, %v28_v1 }
   0x6   :  { %1522 = vmatmul.mubr.msk.f32.vlgmr.msra.gmra.mrb[0].mxu0 %vm117_vm1, %v29_v5  ;;  %1536 = vmatmul.mubr.msk.f32.vlgmr.msra.gmra.mrb[0].mxu1 %vm117_vm1, %v29_v5 }
   0x7   :  { %233 = vmatprep.mubr.f32.mxu0 %v2085_v4  ;;  %370 = vmatprep.mubr.f32.mxu1 %v2085_v4 }
   0x8   :  { %55 = vperm.xlu0 %1673, %v41_v7   ;;  %70 = vperm.xlu1 %1674, %v44_v11  }
   0xa   :  { %1523 = vmatmul.mubr.msk.f32.gmra.mrb[2].mxu0 %vm117_vm1, %v30_v9  ;;  %1537 = vmatmul.mubr.msk.f32.gmra.mrb[2].mxu1 %vm117_vm1, %v30_v9 }
   0xb   :  { %239 = vmatprep.mubr.f32.mxu0 %v2085_v4  ;;  %376 = vmatprep.mubr.f32.mxu1 %v2085_v4 }
   0xc   :  { %60 = vperm.xlu0 %1673, %v42_v10  }
   0xe   :  { %1524 = vmatmul.mubr.msk.f32.gmra.mrb[4].mxu0 %vm117_vm1, %v31_v12  ;;  %1538 = vmatmul.mubr.msk.f32.gmra.mrb[4].mxu1 %vm117_vm1, %v31_v12 }
   0xf   :  { %12 = vsyncpa [#allocation3], 0  ;;  %245 = vmatprep.mubr.f32.mxu0 %v2085_v4  ;;  %382 = vmatprep.mubr.f32.mxu1 %v2085_v4  ;;  %v32_v15 = vld [vmem:[%s2703_s1 + $0x18] sm:$0xff]  ;;  %v45_v16 = vld [vmem:[%s2704_s2 + $0x20] sm:$0xff]  ;;  %vm777_vm2 = vcmask 261120   ;;  %s2087_s25 = smov [#allocation2]  }
  0x10   :  { %95 = vperm.xlu0 %1673, %v49_v13   ;;  %100 = vperm.xlu1 %1674, %v50_v14   ;;  %v46_v17 = vld [vmem:[%s2704_s2 + $0x28] sm:$0xff]  ;;  %v33_v18 = vld [vmem:[%s2703_s1 + $0x20] sm:$0xff]  ;;  %v51_v19 = vld [vmem:[%s2704_s2 + $0x50] sm:$0xff] }
  0x11   :  { %v52_v20 = vld [vmem:[%s2704_s2 + $0x58] sm:$0xff]  ;;  %v34_v21 = vld [vmem:[%s2703_s1 + $0x28] sm:$0xff]  ;;  %v47_v22 = vld [vmem:[%s2704_s2 + $0x30] sm:$0xff] }
  0x12   :  { %1525 = vmatmul.mubr.msk.f32.gmra.mrb[6].mxu0 %vm117_vm1, %v32_v15  ;;  %1539 = vmatmul.mubr.msk.f32.gmra.mrb[6].mxu1 %vm117_vm1, %v32_v15  ;;  %v48_v23 = vld [vmem:[%s2704_s2 + $0x38] sm:$0xff]  ;;  %v35_v24 = vld [vmem:[%s2703_s1 + $0x30] sm:$0xff]  ;;  %v705_v25 = vld [vmem:[%s2706_s4] sm:$0xff] }
  0x13   :  { %251 = vmatprep.mubr.f32.mxu0 %v2085_v4  ;;  %388 = vmatprep.mubr.f32.mxu1 %v2085_v4  ;;  %v706_v26 = vld [vmem:[%s2706_s4 + $0x8] sm:$0xff]  ;;  %v36_v27 = vld [vmem:[%s2703_s1 + $0x38] sm:$0xff]  ;;  %v707_v28 = vld [vmem:[%s2706_s4 + $0x10] sm:$0xff] }
  0x14   :  { %75 = vperm.xlu0 %1673, %v45_v16   ;;  %80 = vperm.xlu1 %1674, %v46_v17   ;;  %v708_v29 = vld [vmem:[%s2706_s4 + $0x18] sm:$0xff]  ;;  %v37_v30 = vld [vmem:[%s2703_s1 + $0x40] sm:$0xff]  ;;  %v714_v32 = vld [vmem:[%s2706_s4 + $0x48] sm:$0xff] }
  0x15   :  { %v713_v31 = vld [vmem:[%s2706_s4 + $0x40] sm:$0xff]  ;;  %v38_v33 = vld [vmem:[%s2703_s1 + $0x48] sm:$0xff]  ;;  %v39_v36 = vld [vmem:[%s2703_s1 + $0x50] sm:$0xff] }
  0x16   :  { %1526 = vmatmul.mubr.msk.f32.gmra.mrb[8].mxu0 %vm117_vm1, %v33_v18  ;;  %1540 = vmatmul.mubr.msk.f32.gmra.mrb[8].mxu1 %vm117_vm1, %v33_v18  ;;  %v709_v34 = vld [vmem:[%s2706_s4 + $0x20] sm:$0xff]  ;;  %v710_v35 = vld [vmem:[%s2706_s4 + $0x28] sm:$0xff]  ;;  %v715_v37 = vld [vmem:[%s2706_s4 + $0x50] sm:$0xff] }
  0x17   :  { %257 = vmatprep.mubr.f32.mxu0 %v2085_v4  ;;  %394 = vmatprep.mubr.f32.mxu1 %v2085_v4  ;;  %v716_v38 = vld [vmem:[%s2706_s4 + $0x58] sm:$0xff]  ;;  %v711_v40 = vld [vmem:[%s2706_s4 + $0x30] sm:$0xff]  ;;  %v1345_v42 = vld [vmem:[%s2708_s6] sm:$0x7] }
  0x18   :  { %105 = vperm.xlu0 %1673, %v51_v19   ;;  %110 = vperm.xlu1 %1674, %v52_v20   ;;  %v40_v39 = vld [vmem:[%s2703_s1 + $0x58] sm:$0xff]  ;;  %s1512_s1 = sshll.u32 %s2087_s25, 4  ;;  %s1513_s1 = int_to_ptr.vmem [resolvable:$true] %s1512_s1 }
  0x19   :  { %v712_v41 = vld [vmem:[%s2706_s4 + $0x38] sm:$0xff]  ;;  %p2066_p1 = scmp.lt.s32.totalorder %s1513_s1, %s1513_s1 }
  0x1a   :  { %1527 = vmatmul.mubr.msk.f32.gmra.mrb[10].mxu0 %vm117_vm1, %v34_v21  ;;  %1541 = vmatmul.mubr.msk.f32.gmra.mrb[10].mxu1 %vm117_vm1, %v34_v21 }
  0x1b   :  { %263 = vmatprep.mubr.f32.mxu0 %v2085_v4  ;;  %400 = vmatprep.mubr.f32.mxu1 %v2085_v4 }
  0x1c   :  { %85 = vperm.xlu0 %1673, %v47_v22   ;;  %90 = vperm.xlu1 %1674, %v48_v23  }
  0x1e   :  { %1528 = vmatmul.mubr.msk.f32.gmra.mrb[12].mxu0 %vm117_vm1, %v35_v24  ;;  %1542 = vmatmul.mubr.msk.f32.gmra.mrb[12].mxu1 %vm117_vm1, %v35_v24 }
  0x1f   :  { %269 = vmatprep.mubr.f32.mxu0 %v2085_v4  ;;  %406 = vmatprep.mubr.f32.mxu1 %v2085_v4 }
  0x20   :  { %719 = vperm.xlu0 %1673, %v705_v25   ;;  %724 = vperm.xlu1 %1674, %v706_v26  }
  0x22   :  { %1529 = vmatmul.mubr.msk.f32.gmra.mrb[14].mxu0 %vm117_vm1, %v36_v27  ;;  %1543 = vmatmul.mubr.msk.f32.gmra.mrb[14].mxu1 %vm117_vm1, %v36_v27 }
  0x23   :  { %275 = vmatprep.mubr.f32.mxu0 %v2085_v4  ;;  %412 = vmatprep.mubr.f32.mxu1 %v2085_v4 }
  0x24   :  { %729 = vperm.xlu0 %1673, %v707_v28   ;;  %734 = vperm.xlu1 %1674, %v708_v29  }
  0x26   :  { %1530 = vmatmul.mubr.msk.f32.gmra.mrb[16].mxu0 %vm117_vm1, %v37_v30  ;;  %1544 = vmatmul.mubr.msk.f32.gmra.mrb[16].mxu1 %vm117_vm1, %v37_v30 }
  0x27   :  { %281 = vmatprep.mubr.f32.mxu0 %v2085_v4  ;;  %418 = vmatprep.mubr.f32.mxu1 %v2085_v4 }
  0x28   :  { %759 = vperm.xlu0 %1673, %v713_v31   ;;  %764 = vperm.xlu1 %1674, %v714_v32  }
  0x2a   :  { %1531 = vmatmul.mubr.msk.f32.gmra.mrb[18].mxu0 %vm117_vm1, %v38_v33  ;;  %1545 = vmatmul.mubr.msk.f32.gmra.mrb[18].mxu1 %vm117_vm1, %v38_v33 }
  0x2b   :  { %287 = vmatprep.mubr.f32.mxu0 %v2085_v4  ;;  %424 = vmatprep.mubr.f32.mxu1 %v2085_v4 }
  0x2c   :  { %739 = vperm.xlu0 %1673, %v709_v34   ;;  %744 = vperm.xlu1 %1674, %v710_v35  }
  0x2e   :  { %1532 = vmatmul.mubr.msk.f32.gmra.mrb[20].mxu0 %vm117_vm1, %v39_v36  ;;  %1546 = vmatmul.mubr.msk.f32.gmra.mrb[20].mxu1 %vm117_vm1, %v39_v36 }
  0x2f   :  { %293 = vmatprep.mubr.f32.mxu0 %v2085_v4  ;;  %430 = vmatprep.mubr.f32.mxu1 %v2085_v4 }
  0x30   :  { %769 = vperm.xlu0 %1673, %v715_v37   ;;  %774 = vperm.xlu1 %1674, %v716_v38  }
  0x32   :  { %1533 = vmatmul.mubr.msk.f32.gmra.mrb[22].mxu0 %vm117_vm1, %v40_v39  ;;  %1547 = vmatmul.mubr.msk.f32.gmra.mrb[22].mxu1 %vm117_vm1, %v40_v39 }
  0x33   :  { %878 = vmatprep.mubr.f32.mxu0 %v2085_v4  ;;  %1015 = vmatprep.mubr.f32.mxu1 %v2085_v4 }
  0x34   :  { %749 = vperm.xlu0 %1673, %v711_v40   ;;  %754 = vperm.xlu1 %1674, %v712_v41  }
  0x38   :  { %1348 = vperm.xlu0 %1673, %v1345_v42  }
  0x82   :  { %v66_v53 = vpop.permute.xlu1 %65 }
  0x87   :  { %v56_v43 = vpop.permute.xlu0 %55  ;;  %v71_v15 = vpop.permute.xlu1 %70 }
  0x8b   :  { %v61_v52 = vpop.permute.xlu0 %60 }
  0x8f   :  { %v2295_v14 = vpop.permute.xlu0 %95 }
  0x93   :  { %v76_v38 = vpop.permute.xlu0 %75 }
  0xd9   :  { %v229_v44 = vpop.f32.mrb[0].mxu0  ;;  %v366_v45 = vpop.f32.mrb[0].mxu1 }
  0xda   :  { %v230_v46 = vadd.f32 %v229_v44, %v56_v43  ;;  %v367_v47 = vadd.f32 %v366_v45, %v56_v43  ;;  %v231_v48 = vpop.f32.mrb[1].mxu0  ;;  %v368_v49 = vpop.f32.mrb[1].mxu1 }
  0xdb   :  { %v232_v50 = vadd.f32 %v231_v48, %v56_v43  ;;  %v369_v51 = vadd.f32 %v368_v49, %v56_v43 }
  0xdc   :  { %v1548_v54 = vmul.f32 -1.442695, %v230_v46  ;;  %v1550_v55 = vmul.f32 -1.442695, %v367_v47 }
  0xdd   :  { %v1549_v56 = vmul.f32 -1.442695, %v232_v50  ;;  %v1551_v57 = vmul.f32 -1.442695, %v369_v51  ;;  %v235_v58 = vpop.f32.mrb[2].mxu0  ;;  %v372_v59 = vpop.f32.mrb[2].mxu1 }
  0xde   :  { %1677 = vpow2.f32 %v1548_v54  ;;  %v236_v60 = vadd.f32 %v235_v58, %v61_v52  ;;  %v373_v61 = vadd.f32 %v372_v59, %v61_v52  ;;  %v237_v62 = vpop.f32.mrb[3].mxu0  ;;  %v374_v63 = vpop.f32.mrb[3].mxu1 }
  0xdf   :  { %1679 = vpow2.f32 %v1550_v55  ;;  %v238_v0 = vadd.f32 %v237_v62, %v61_v52  ;;  %v375_v1 = vadd.f32 %v374_v63, %v61_v52  ;;  %v2303_v51 = vpop.permute.xlu1 %100 }
  0xe0   :  { %1681 = vpow2.f32 %v1549_v56  ;;  %v1552_v2 = vmul.f32 -1.442695, %v236_v60  ;;  %v1554_v3 = vmul.f32 -1.442695, %v373_v61 }
  0xe1   :  { %1683 = vpow2.f32 %v1551_v57  ;;  %v1553_v5 = vmul.f32 -1.442695, %v238_v0  ;;  %v1555_v6 = vmul.f32 -1.442695, %v375_v1  ;;  %v241_v7 = vpop.f32.mrb[4].mxu0  ;;  %v378_v8 = vpop.f32.mrb[4].mxu1 }
  0xe2   :  { %1685 = vpow2.f32 %v1552_v2  ;;  %v242_v9 = vadd.f32 %v241_v7, %v66_v53  ;;  %v379_v10 = vadd.f32 %v378_v8, %v66_v53  ;;  %v243_v11 = vpop.f32.mrb[5].mxu0  ;;  %v380_v12 = vpop.f32.mrb[5].mxu1 }
  0xe3   :  { %1687 = vpow2.f32 %v1554_v3  ;;  %v244_v13 = vadd.f32 %v243_v11, %v66_v53  ;;  %v381_v18 = vadd.f32 %v380_v12, %v66_v53  ;;  %v2309_v0 = vpop.permute.xlu0 %105 }
  0xe4   :  { %1689 = vpow2.f32 %v1553_v5  ;;  %v1556_v16 = vmul.f32 -1.442695, %v242_v9  ;;  %v1558_v17 = vmul.f32 -1.442695, %v379_v10 }
  0xe5   :  { %1691 = vpow2.f32 %v1555_v6  ;;  %v247_v19 = vpop.f32.mrb[6].mxu0  ;;  %v384_v20 = vpop.f32.mrb[6].mxu1  ;;  %v1557_v24 = vmul.f32 -1.442695, %v244_v13  ;;  %v1559_v26 = vmul.f32 -1.442695, %v381_v18 }
  0xe6   :  { %1693 = vpow2.f32 %v1556_v16  ;;  %v248_v21 = vadd.f32 %v247_v19, %v71_v15  ;;  %v249_v22 = vpop.f32.mrb[7].mxu0  ;;  %v386_v23 = vpop.f32.mrb[7].mxu1  ;;  %v385_v53 = vadd.f32 %v384_v20, %v71_v15 }
  0xe7   :  { %1695 = vpow2.f32 %v1558_v17  ;;  %v250_v56 = vadd.f32 %v249_v22, %v71_v15  ;;  %v387_v60 = vadd.f32 %v386_v23, %v71_v15  ;;  %v81_v15 = vpop.permute.xlu1 %80 }
  0xe8   :  { %v1678_v25 = vpop.eup %1677  ;;  %v1560_v28 = vmul.f32 -1.442695, %v248_v21  ;;  %1697 = vpow2.f32 %v1557_v24  ;;  %v1562_v1 = vmul.f32 -1.442695, %v385_v53 }
  0xe9   :  { %v1680_v27 = vpop.eup %1679  ;;  %v253_v29 = vpop.f32.mrb[8].mxu0  ;;  %v485_v31 = vadd.f32 1.0, %v1678_v25  ;;  %1699 = vpow2.f32 %v1559_v26  ;;  %v1561_v3 = vmul.f32 -1.442695, %v250_v56  ;;  %v1563_v8 = vmul.f32 -1.442695, %v387_v60 }
  0xea   :  { %v1682_v30 = vpop.eup %1681  ;;  %v390_v32 = vpop.f32.mrb[8].mxu1  ;;  %v487_v35 = vadd.f32 1.0, %v1680_v27  ;;  %1701 = vpow2.f32 %v1560_v28  ;;  %v254_v12 = vadd.f32 %v253_v29, %v76_v38 }
  0xeb   :  { %v255_v33 = vpop.f32.mrb[9].mxu0  ;;  %v1684_v34 = vpop.eup %1683  ;;  %v486_v39 = vadd.f32 1.0, %v1682_v30  ;;  %1703 = vrcp.f32 %v485_v31  ;;  %v391_v16 = vadd.f32 %v390_v32, %v76_v38 }
  0xec   :  { %v2297_v36 = vpop.f32.mrb[9].mxu1  ;;  %v1686_v37 = vpop.eup %1685  ;;  %v488_v41 = vadd.f32 1.0, %v1684_v34  ;;  %1705 = vrcp.f32 %v487_v35  ;;  %v256_v18 = vadd.f32 %v255_v33, %v76_v38 }
  0xed   :  { %v1688_v40 = vpop.eup %1687  ;;  %v259_v42 = vpop.f32.mrb[10].mxu0  ;;  %v489_v45 = vadd.f32 1.0, %v1686_v37  ;;  %1707 = vrcp.f32 %v486_v39  ;;  %v393_v22 = vadd.f32 %v2297_v36, %v76_v38 }
  0xee   :  { %v2299_v43 = vpop.f32.mrb[10].mxu1  ;;  %v1690_v44 = vpop.eup %1689  ;;  %v491_v49 = vadd.f32 1.0, %v1688_v40  ;;  %1709 = vrcp.f32 %v488_v41  ;;  %v260_v26 = vadd.f32 %v259_v42, %v81_v15 }
  0xef   :  { %v261_v46 = vpop.f32.mrb[11].mxu0  ;;  %v2301_v47 = vpop.f32.mrb[11].mxu1  ;;  %v490_v52 = vadd.f32 1.0, %v1690_v44  ;;  %1711 = vrcp.f32 %v489_v45  ;;  %v397_v29 = vadd.f32 %v2299_v43, %v81_v15 }
  0xf0   :  { %v1692_v48 = vpop.eup %1691  ;;  %1713 = vrcp.f32 %v491_v49  ;;  %v2328_v28 = vpop.permute.xlu0 %85  ;;  %v262_v31 = vadd.f32 %v261_v46, %v81_v15  ;;  %v399_v35 = vadd.f32 %v2301_v47, %v81_v15 }
  0xf1   :  { %v1694_v50 = vpop.eup %1693  ;;  %v492_v55 = vadd.f32 1.0, %v1692_v48  ;;  %v265_v57 = vpop.f32.mrb[12].mxu0  ;;  %1715 = vrcp.f32 %v490_v52 }
  0xf2   :  { %v1696_v54 = vpop.eup %1695  ;;  %v402_v58 = vpop.f32.mrb[12].mxu1  ;;  %v493_v59 = vadd.f32 1.0, %v1694_v50  ;;  %v266_v39 = vadd.f32 %v265_v57, %v2328_v28 }
  0xf3   :  { %v2305_v61 = vpop.f32.mrb[13].mxu0  ;;  %v2307_v62 = vpop.f32.mrb[13].mxu1  ;;  %v495_v63 = vadd.f32 1.0, %v1696_v54  ;;  %1717 = vrcp.f32 %v492_v55  ;;  %v403_v41 = vadd.f32 %v402_v58, %v2328_v28 }
  0xf4   :  { %v1698_v2 = vpop.eup %1697  ;;  %1719 = vrcp.f32 %v493_v59  ;;  %v2358_v15 = vpop.permute.xlu1 %110 }
  0xf5   :  { %v2311_v5 = vpop.f32.mrb[14].mxu0  ;;  %v2313_v6 = vpop.f32.mrb[14].mxu1  ;;  %1721 = vrcp.f32 %v495_v63  ;;  %v494_v46 = vadd.f32 1.0, %v1698_v2 }
  0xf6   :  { %v1700_v7 = vpop.eup %1699  ;;  %v2315_v9 = vpop.f32.mrb[15].mxu0  ;;  %1723 = vpow2.f32 %v1562_v1 }
  0xf7   :  { %v2317_v10 = vpop.f32.mrb[15].mxu1  ;;  %v1702_v11 = vpop.eup %1701  ;;  %1725 = vpow2.f32 %v1561_v3  ;;  %v496_v50 = vadd.f32 1.0, %v1700_v7 }
  0xf8   :  { %v1704_v13 = vpop.eup %1703  ;;  %1727 = vpow2.f32 %v1563_v8  ;;  %v497_v53 = vadd.f32 1.0, %v1702_v11 }
  0xf9   :  { %v1706_v17 = vpop.eup %1705  ;;  %v2319_v19 = vpop.f32.mrb[16].mxu0  ;;  %1729 = vtanh.f32 %v254_v12 }
  0xfa   :  { %v2321_v20 = vpop.f32.mrb[16].mxu1  ;;  %v1708_v21 = vpop.eup %1707  ;;  %1731 = vtanh.f32 %v391_v16 }
  0xfb   :  { %v2324_v23 = vpop.f32.mrb[17].mxu0  ;;  %v2326_v24 = vpop.f32.mrb[17].mxu1  ;;  %1733 = vtanh.f32 %v256_v18 }
  0xfc   :  { %v1710_v25 = vpop.eup %1709  ;;  %1735 = vtanh.f32 %v393_v22 }
  0xfd   :  { %v1712_v27 = vpop.eup %1711  ;;  %v2331_v32 = vpop.f32.mrb[18].mxu0  ;;  %1737 = vtanh.f32 %v260_v26 }
  0xfe   :  { %v1714_v30 = vpop.eup %1713  ;;  %v2333_v33 = vpop.f32.mrb[18].mxu1  ;;  %1739 = vtanh.f32 %v397_v29 }
  0xff   :  { %v1716_v34 = vpop.eup %1715  ;;  %v2336_v36 = vpop.f32.mrb[19].mxu0  ;;  %1741 = vtanh.f32 %v262_v31 }
 0x100   :  { %v2338_v37 = vpop.f32.mrb[19].mxu1  ;;  %v1718_v38 = vpop.eup %1717  ;;  %1743 = vtanh.f32 %v399_v35 }
 0x101   :  { %v1720_v40 = vpop.eup %1719  ;;  %v2342_v43 = vpop.f32.mrb[20].mxu0  ;;  %1745 = vtanh.f32 %v266_v39 }
 0x102   :  { %v1722_v42 = vpop.eup %1721  ;;  %v2344_v44 = vpop.f32.mrb[20].mxu1  ;;  %1747 = vtanh.f32 %v403_v41  ;;  %v268_v41 = vadd.f32 %v2305_v61, %v2328_v28  ;;  %v415_v61 = vadd.f32 %v2321_v20, %v2295_v14  ;;  %v284_v20 = vadd.f32 %v2331_v32, %v2303_v51 }
 0x103   :  { %v1724_v45 = vpop.eup %1723  ;;  %v2346_v47 = vpop.f32.mrb[21].mxu0  ;;  %1749 = vrcp.f32 %v494_v46 }
 0x104   :  { %v2348_v48 = vpop.f32.mrb[21].mxu1  ;;  %v1726_v49 = vpop.eup %1725  ;;  %v499_v55 = vadd.f32 1.0, %v1724_v45  ;;  %1751 = vrcp.f32 %v496_v50  ;;  %v1568_v32 = vmul.f32 -1.442695, %v284_v20 }
 0x105   :  { %v1728_v52 = vpop.eup %1727  ;;  %v2350_v56 = vpop.f32.mrb[22].mxu0  ;;  %v498_v58 = vadd.f32 1.0, %v1726_v49  ;;  %1753 = vrcp.f32 %v497_v53  ;;  %v1566_v53 = vmul.f32 -1.442695, %v415_v61  ;;  %v292_v61 = vadd.f32 %v2346_v47, %v2309_v0 }
 0x106   :  { %v1730_v54 = vpop.eup %1729  ;;  %v2352_v60 = vpop.f32.mrb[22].mxu1  ;;  %v500_v2 = vadd.f32 1.0, %v1728_v52  ;;  %1755 = vrcp.f32 %v499_v55 }
 0x107   :  { %v1732_v57 = vpop.eup %1731  ;;  %v645_v59 = vmul.f32 %v1730_v54, %v1704_v13  ;;  %v2354_v63 = vpop.f32.mrb[23].mxu0  ;;  %1757 = vrcp.f32 %v498_v58  ;;  %v433_v47 = vadd.f32 %v2352_v60, %v2358_v15 }
 0x108   :  { %v1734_v1 = vpop.eup %1733  ;;  %v647_v3 = vmul.f32 %v1732_v57, %v1706_v17  ;;  %v2356_v7 = vpop.f32.mrb[23].mxu1  ;;  %1759 = vrcp.f32 %v500_v2 }
 0x109   :  { %v1736_v8 = vpop.eup %1735  ;;  %v646_v11 = vmul.f32 %v1734_v1, %v1708_v21  ;;  %1761 = vtanh.f32 %v645_v59  ;;  %v91_v45 = vpop.permute.xlu1 %90  ;;  %v1578_v60 = vmul.f32 -1.442695, %v433_v47 }
 0x10a   :  { %v1738_v12 = vpop.eup %1737  ;;  %v648_v16 = vmul.f32 %v1736_v8, %v1710_v25  ;;  %1763 = vtanh.f32 %v647_v3 }
 0x10b   :  { %v1740_v18 = vpop.eup %1739  ;;  %v649_v13 = vmul.f32 %v1738_v12, %v1712_v27  ;;  %1765 = vtanh.f32 %v646_v11  ;;  %v405_v27 = vadd.f32 %v2307_v62, %v2328_v28  ;;  %v280_v62 = vadd.f32 %v2324_v23, %v2295_v14 }
 0x10c   :  { %v1742_v22 = vpop.eup %1741  ;;  %v651_v26 = vmul.f32 %v1740_v18, %v1714_v30  ;;  %1767 = vtanh.f32 %v648_v16  ;;  %v272_v30 = vadd.f32 %v2311_v5, %v91_v45  ;;  %v411_v5 = vadd.f32 %v2317_v10, %v91_v45 }
 0x10d   :  { %v1744_v29 = vpop.eup %1743  ;;  %v650_v31 = vmul.f32 %v1742_v22, %v1716_v34  ;;  %1769 = vtanh.f32 %v649_v13  ;;  %v278_v34 = vadd.f32 %v2319_v19, %v2295_v14  ;;  %v417_v19 = vadd.f32 %v2326_v24, %v2295_v14 }
 0x10e   :  { %v1746_v17 = vpop.eup %1745  ;;  %v652_v35 = vmul.f32 %v1744_v29, %v1718_v38  ;;  %1771 = vtanh.f32 %v651_v26  ;;  %v1565_v54 = vmul.f32 -1.442695, %v280_v62  ;;  %v286_v10 = vadd.f32 %v2336_v36, %v2303_v51 }
 0x10f   :  { %v1748_v39 = vpop.eup %1747  ;;  %v653_v21 = vmul.f32 %v1746_v17, %v1720_v40  ;;  %v409_v40 = vadd.f32 %v2313_v6, %v91_v45  ;;  %1773 = vtanh.f32 %v268_v41  ;;  %v1564_v6 = vmul.f32 -1.442695, %v278_v34 }
 0x110   :  { %v655_v25 = vmul.f32 %v1748_v39, %v1722_v42  ;;  %v1750_v46 = vpop.eup %1749  ;;  %v274_v42 = vadd.f32 %v2315_v9, %v91_v45  ;;  %1775 = vtanh.f32 %v405_v27  ;;  %v421_v9 = vadd.f32 %v2333_v33, %v2303_v51 }
 0x111   :  { %v1752_v38 = vpop.eup %1751  ;;  %1777 = vtanh.f32 %v272_v30  ;;  %v1567_v24 = vmul.f32 -1.442695, %v417_v19  ;;  %v1569_v59 = vmul.f32 -1.442695, %v286_v10  ;;  %v423_v27 = vadd.f32 %v2338_v37, %v2303_v51 }
 0x112   :  { %v1754_v49 = vpop.eup %1753  ;;  %1779 = vtanh.f32 %v409_v40  ;;  %v1570_v58 = vmul.f32 -1.442695, %v421_v9  ;;  %v427_v34 = vadd.f32 %v2344_v44, %v2309_v0  ;;  %v296_v44 = vadd.f32 %v2350_v56, %v2358_v15 }
 0x113   :  { %v1756_v28 = vpop.eup %1755  ;;  %1781 = vtanh.f32 %v274_v42  ;;  %v1571_v37 = vmul.f32 -1.442695, %v423_v27  ;;  %v429_v42 = vadd.f32 %v2348_v48, %v2309_v0  ;;  %v435_v56 = vadd.f32 %v2356_v7, %v2358_v15 }
 0x114   :  { %v1758_v50 = vpop.eup %1757  ;;  %1783 = vtanh.f32 %v411_v5  ;;  %v1574_v19 = vmul.f32 -1.442695, %v427_v34 }
 0x115   :  { %v1760_v52 = vpop.eup %1759  ;;  %1785 = vpow2.f32 %v1564_v6  ;;  %v1573_v6 = vmul.f32 -1.442695, %v292_v61  ;;  %v1575_v20 = vmul.f32 -1.442695, %v429_v42 }
 0x116   :  { %v2380_v23 = vpop.eup %1761  ;;  %1787 = vpow2.f32 %v1566_v53  ;;  %v1576_v53 = vmul.f32 -1.442695, %v296_v44 }
 0x117   :  { %v2384_v14 = vpop.eup %1763  ;;  %1789 = vpow2.f32 %v1565_v54 }
 0x118   :  { %v2386_v55 = vpop.eup %1765  ;;  %1791 = vpow2.f32 %v1567_v24 }
 0x119   :  { %v2388_v57 = vpop.eup %1767  ;;  %1793 = vpow2.f32 %v1568_v32 }
 0x11a   :  { %v2390_v33 = vpop.eup %1769  ;;  %1795 = vpow2.f32 %v1570_v58 }
 0x11b   :  { %v2392_v1 = vpop.eup %1771  ;;  %1797 = vpow2.f32 %v1569_v59 }
 0x11c   :  { %v1774_v36 = vpop.eup %1773  ;;  %1799 = vtanh.f32 %v650_v31 }
 0x11d   :  { %v1776_v2 = vpop.eup %1775  ;;  %v654_v3 = vmul.f32 %v1774_v36, %v1750_v46  ;;  %1801 = vtanh.f32 %v652_v35 }
 0x11e   :  { %v1778_v8 = vpop.eup %1777  ;;  %v656_v11 = vmul.f32 %v1776_v2, %v1752_v38  ;;  %1803 = vtanh.f32 %v653_v21  ;;  %v290_v21 = vadd.f32 %v2342_v43, %v2309_v0  ;;  %v298_v0 = vadd.f32 %v2354_v63, %v2358_v15 }
 0x11f   :  { %v1780_v12 = vpop.eup %1779  ;;  %v2394_v16 = vmul.f32 %v1778_v8, %v1754_v49  ;;  %1805 = vtanh.f32 %v655_v25  ;;  %v1579_v63 = vmul.f32 -1.442695, %v435_v56 }
 0x120   :  { %v1782_v18 = vpop.eup %1781  ;;  %v2396_v13 = vmul.f32 %v1780_v12, %v1756_v28  ;;  %1807 = vtanh.f32 %v654_v3  ;;  %v1572_v28 = vmul.f32 -1.442695, %v290_v21  ;;  %v1577_v10 = vmul.f32 -1.442695, %v298_v0 }
 0x121   :  { %v1784_v22 = vpop.eup %1783  ;;  %v2398_v26 = vmul.f32 %v1782_v18, %v1758_v50  ;;  %1809 = vtanh.f32 %v656_v11 }
 0x122   :  { %v1786_v29 = vpop.eup %1785  ;;  %v2400_v17 = vmul.f32 %v1784_v22, %v1760_v52 }
 0x123   :  { %v1788_v39 = vpop.eup %1787  ;;  %v597_v41 = vadd.f32 1.0, %v1786_v29 }
 0x124   :  { %v1790_v45 = vpop.eup %1789  ;;  %v599_v31 = vadd.f32 1.0, %v1788_v39 }
 0x125   :  { %v1792_v35 = vpop.eup %1791  ;;  %1811 = vrcp.f32 %v597_v41  ;;  %v598_v46 = vadd.f32 1.0, %v1790_v45 }
 0x126   :  { %v1794_v30 = vpop.eup %1793  ;;  %1813 = vrcp.f32 %v599_v31  ;;  %v600_v25 = vadd.f32 1.0, %v1792_v35 }
 0x127   :  { %v1796_v38 = vpop.eup %1795  ;;  %1815 = vrcp.f32 %v598_v46  ;;  %v601_v40 = vadd.f32 1.0, %v1794_v30 }
 0x128   :  { %v1798_v49 = vpop.eup %1797  ;;  %1817 = vrcp.f32 %v600_v25  ;;  %v603_v51 = vadd.f32 1.0, %v1796_v38 }
 0x129   :  { %v1800_v43 = vpop.eup %1799  ;;  %1819 = vrcp.f32 %v601_v40  ;;  %v602_v62 = vadd.f32 1.0, %v1798_v49 }
 0x12a   :  { %v2414_v5 = vpop.eup %1801  ;;  %1821 = vrcp.f32 %v603_v51 }
 0x12b   :  { %v2418_v50 = vpop.eup %1803  ;;  %1823 = vrcp.f32 %v602_v62 }
 0x12c   :  { %v2422_v48 = vpop.eup %1805  ;;  %1825 = vpow2.f32 %v1571_v37 }
 0x12d   :  { %v2426_v52 = vpop.eup %1807  ;;  %1827 = vpow2.f32 %v1572_v28 }
 0x12e   :  { %v2428_v9 = vpop.eup %1809  ;;  %1829 = vpow2.f32 %v1574_v19 }
 0x12f   :  { %v1812_v54 = vpop.eup %1811  ;;  %1831 = vpow2.f32 %v1573_v6 }
 0x130   :  { %v1814_v24 = vpop.eup %1813  ;;  %1833 = vpow2.f32 %v1575_v20  ;;  %v677_v32 = vmul.f32 %v1812_v54, %v2380_v23 }
 0x131   :  { %v1816_v58 = vpop.eup %1815  ;;  %1835 = vpow2.f32 %v1576_v53  ;;  %v2432_v7 = vmul.f32 %v1814_v24, %v2384_v14 }
 0x132   :  { %v1818_v15 = vpop.eup %1817  ;;  %1837 = vpow2.f32 %v1578_v60  ;;  %v678_v59 = vmul.f32 %v1816_v58, %v2386_v55  ;;  %v697_v58 = vld [vmem:[%s2705_s3 + $0x20] sm:$0xff] }
 0x133   :  { %v1820_v36 = vpop.eup %1819  ;;  %1839 = vpow2.f32 %v1577_v10  ;;  %v680_v2 = vmul.f32 %v1818_v15, %v2388_v57  ;;  %v699_v15 = vld [vmem:[%s2705_s3 + $0x30] sm:$0xff] }
 0x134   :  { %v1822_v3 = vpop.eup %1821  ;;  %1841 = vpow2.f32 %v1579_v63  ;;  %v681_v8 = vmul.f32 %v1820_v36, %v2390_v33  ;;  %v701_v36 = vld [vmem:[%s2705_s3 + $0x40] sm:$0xff] }
 0x135   :  { %v1824_v11 = vpop.eup %1823  ;;  %1843 = vtanh.f32 %v2394_v16  ;;  %v683_v23 = vmul.f32 %v1822_v3, %v2392_v1  ;;  %v703_v3 = vld [vmem:[%s2705_s3 + $0x50] sm:$0xff] }
 0x136   :  { %v1826_v12 = vpop.eup %1825  ;;  %1845 = vtanh.f32 %v2396_v13  ;;  %v682_v14 = vmul.f32 %v1824_v11, %v1800_v43  ;;  %v1640_v18 = vpack.c.bf16 %v681_v8, %v677_v32  ;;  %v696_v32 = vld [vmem:[%s2705_s3 + $0x18] sm:$0xff]  ;;  %v720_v11 = vpop.permute.xlu0 %719 }
 0x137   :  { %v1828_v22 = vpop.eup %1827  ;;  %1847 = vtanh.f32 %v2398_v26  ;;  %v604_v55 = vadd.f32 1.0, %v1826_v12  ;;  %v1648_v57 = vpack.c.bf16 %v683_v23, %v2432_v7  ;;  %v698_v7 = vld [vmem:[%s2705_s3 + $0x28] sm:$0xff]  ;;  %v704_v8 = vld [vmem:[%s2705_s3 + $0x58] sm:$0xff] }
 0x138   :  { %v1830_v29 = vpop.eup %1829  ;;  %1849 = vtanh.f32 %v2400_v17  ;;  %v605_v33 = vadd.f32 1.0, %v1828_v22  ;;  %v1638_v39 = vpack.c.bf16 %v682_v14, %v678_v59  ;;  %v700_v59 = vld [vmem:[%s2705_s3 + $0x38] sm:$0xff] }
 0x139   :  { %v1832_v41 = vpop.eup %1831  ;;  %1851 = vrcp.f32 %v604_v55  ;;  %v607_v16 = vadd.f32 1.0, %v1830_v29 }
 0x13a   :  { %v1834_v1 = vpop.eup %1833  ;;  %1853 = vrcp.f32 %v605_v33  ;;  %v606_v45 = vadd.f32 1.0, %v1832_v41  ;;  %1639 = vmatprep.subr.bf16.mxu0 %v1638_v39  ;;  %v725_v39 = vpop.permute.xlu1 %724 }
 0x13b   :  { %v1836_v13 = vpop.eup %1835  ;;  %1855 = vrcp.f32 %v607_v16  ;;  %v608_v31 = vadd.f32 1.0, %v1834_v1  ;;  %1641 = vmatpush1.bf16.msra.mxu0 %v1640_v18 }
 0x13c   :  { %v1838_v26 = vpop.eup %1837  ;;  %1857 = vrcp.f32 %v606_v45  ;;  %v609_v27 = vadd.f32 1.0, %v1836_v13 }
 0x13d   :  { %v1840_v35 = vpop.eup %1839  ;;  %1859 = vrcp.f32 %v608_v31  ;;  %v611_v46 = vadd.f32 1.0, %v1838_v26 }
 0x13e   :  { %v1842_v17 = vpop.eup %1841  ;;  %1861 = vrcp.f32 %v609_v27  ;;  %v610_v21 = vadd.f32 1.0, %v1840_v35 }
 0x13f   :  { %v1844_v30 = vpop.eup %1843  ;;  %1863 = vrcp.f32 %v611_v46  ;;  %v612_v25 = vadd.f32 1.0, %v1842_v17 }
 0x140   :  { %v1846_v34 = vpop.eup %1845  ;;  %1865 = vrcp.f32 %v610_v21  ;;  %v730_v21 = vpop.permute.xlu0 %729 }
 0x141   :  { %v1848_v38 = vpop.eup %1847  ;;  %1867 = vrcp.f32 %v612_v25 }
 0x142   :  { %v1850_v40 = vpop.eup %1849 }
 0x143   :  { %v1852_v61 = vpop.eup %1851 }
 0x144   :  { %v1854_v49 = vpop.eup %1853  ;;  %v684_v51 = vmul.f32 %v1852_v61, %v2414_v5 }
 0x145   :  { %v1856_v37 = vpop.eup %1855  ;;  %v685_v42 = vmul.f32 %v1854_v49, %v2418_v50 }
 0x146   :  { %v1858_v43 = vpop.eup %1857  ;;  %v1646_v62 = vpack.c.bf16 %v684_v51, %v680_v2  ;;  %v687_v28 = vmul.f32 %v1856_v37, %v2422_v48  ;;  %v693_v48 = vld [vmem:[%s2705_s3] sm:$0xff]  ;;  %v702_v2 = vld [vmem:[%s2705_s3 + $0x48] sm:$0xff] }
 0x147   :  { %v1860_v44 = vpop.eup %1859  ;;  %v686_v19 = vmul.f32 %v1858_v43, %v2426_v52  ;;  %v694_v52 = vld [vmem:[%s2705_s3 + $0x8] sm:$0xff] }
 0x148   :  { %v1862_v47 = vpop.eup %1861  ;;  %1647 = vmatprep.subr.bf16.mxu1 %v1646_v62  ;;  %v688_v6 = vmul.f32 %v1860_v44, %v2428_v9  ;;  %v695_v9 = vld [vmem:[%s2705_s3 + $0x10] sm:$0xff] }
 0x149   :  { %v1864_v0 = vpop.eup %1863  ;;  %1649 = vmatpush1.bf16.msra.mxu1 %v1648_v57  ;;  %v689_v20 = vmul.f32 %v1862_v47, %v1844_v30 }
 0x14a   :  { %v1866_v56 = vpop.eup %1865  ;;  %v691_v53 = vmul.f32 %v1864_v0, %v1846_v34 }
 0x14b   :  { %v1868_v5 = vpop.eup %1867  ;;  %v690_v60 = vmul.f32 %v1866_v56, %v1848_v38  ;;  %v1644_v54 = vpack.c.bf16 %v689_v20, %v685_v42 }
 0x14c   :  { %v692_v50 = vmul.f32 %v1868_v5, %v1850_v40  ;;  %v1652_v10 = vpack.c.bf16 %v691_v53, %v687_v28  ;;  %v735_v28 = vpop.permute.xlu1 %734 }
 0x14d   :  { %v1642_v24 = vpack.c.bf16 %v690_v60, %v686_v19 }
 0x14e   :  { %v1650_v63 = vpack.c.bf16 %v692_v50, %v688_v6 }
 0x14f   :  { %1643 = vmatprep.subr.bf16.mxu0 %v1642_v24 }
 0x150   :  { %1651 = vmatprep.subr.bf16.mxu1 %v1650_v63  ;;  %1645 = vmatpush1.bf16.msra.mxu0 %v1644_v54 }
 0x151   :  { %1653 = vmatpush1.bf16.msra.mxu1 %v1652_v10 }
 0x153   :  { %1580 = vmatmul.mubr.msk.f32.vlgmr.msra.gmra.mrb[24].mxu0 %vm777_vm2, %v693_v48 }
 0x154   :  { %1592 = vmatmul.mubr.msk.f32.vlgmr.msra.gmra.mrb[24].mxu1 %vm777_vm2, %v693_v48  ;;  %884 = vmatprep.mubr.f32.mxu0 %v2085_v4 }
 0x155   :  { %1021 = vmatprep.mubr.f32.mxu1 %v2085_v4 }
 0x157   :  { %1581 = vmatmul.mubr.msk.f32.gmra.mrb[26].mxu0 %vm777_vm2, %v694_v52 }
 0x158   :  { %1593 = vmatmul.mubr.msk.f32.gmra.mrb[26].mxu1 %vm777_vm2, %v694_v52  ;;  %890 = vmatprep.mubr.f32.mxu0 %v2085_v4 }
 0x159   :  { %1027 = vmatprep.mubr.f32.mxu1 %v2085_v4 }
 0x15b   :  { %1582 = vmatmul.mubr.msk.f32.gmra.mrb[28].mxu0 %vm777_vm2, %v695_v9 }
 0x15c   :  { %1594 = vmatmul.mubr.msk.f32.gmra.mrb[28].mxu1 %vm777_vm2, %v695_v9  ;;  %896 = vmatprep.mubr.f32.mxu0 %v2085_v4  ;;  %v2534_v9 = vpop.permute.xlu0 %759 }
 0x15d   :  { %1033 = vmatprep.mubr.f32.mxu1 %v2085_v4 }
 0x15f   :  { %1583 = vmatmul.mubr.msk.f32.gmra.mrb[30].mxu0 %vm777_vm2, %v696_v32 }
 0x160   :  { %1595 = vmatmul.mubr.msk.f32.gmra.mrb[30].mxu1 %vm777_vm2, %v696_v32  ;;  %902 = vmatprep.mubr.f32.mxu0 %v2085_v4 }
 0x161   :  { %1039 = vmatprep.mubr.f32.mxu1 %v2085_v4 }
 0x163   :  { %1584 = vmatmul.mubr.msk.f32.gmra.mrb[32].mxu0 %vm777_vm2, %v697_v58 }
 0x164   :  { %1596 = vmatmul.mubr.msk.f32.gmra.mrb[32].mxu1 %vm777_vm2, %v697_v58  ;;  %908 = vmatprep.mubr.f32.mxu0 %v2085_v4 }
 0x165   :  { %1045 = vmatprep.mubr.f32.mxu1 %v2085_v4 }
 0x167   :  { %1585 = vmatmul.mubr.msk.f32.gmra.mrb[34].mxu0 %vm777_vm2, %v698_v7 }
 0x168   :  { %1597 = vmatmul.mubr.msk.f32.gmra.mrb[34].mxu1 %vm777_vm2, %v698_v7  ;;  %914 = vmatprep.mubr.f32.mxu0 %v2085_v4 }
 0x169   :  { %1051 = vmatprep.mubr.f32.mxu1 %v2085_v4 }
 0x16b   :  { %1586 = vmatmul.mubr.msk.f32.gmra.mrb[36].mxu0 %vm777_vm2, %v699_v15 }
 0x16c   :  { %1598 = vmatmul.mubr.msk.f32.gmra.mrb[36].mxu1 %vm777_vm2, %v699_v15  ;;  %920 = vmatprep.mubr.f32.mxu0 %v2085_v4 }
 0x16d   :  { %1057 = vmatprep.mubr.f32.mxu1 %v2085_v4 }
 0x16f   :  { %1587 = vmatmul.mubr.msk.f32.gmra.mrb[38].mxu0 %vm777_vm2, %v700_v59 }
 0x170   :  { %1599 = vmatmul.mubr.msk.f32.gmra.mrb[38].mxu1 %vm777_vm2, %v700_v59  ;;  %926 = vmatprep.mubr.f32.mxu0 %v2085_v4 }
 0x171   :  { %1063 = vmatprep.mubr.f32.mxu1 %v2085_v4 }
 0x173   :  { %1588 = vmatmul.mubr.msk.f32.gmra.mrb[40].mxu0 %vm777_vm2, %v701_v36 }
 0x174   :  { %1600 = vmatmul.mubr.msk.f32.gmra.mrb[40].mxu1 %vm777_vm2, %v701_v36  ;;  %932 = vmatprep.mubr.f32.mxu0 %v2085_v4 }
 0x175   :  { %1069 = vmatprep.mubr.f32.mxu1 %v2085_v4 }
 0x177   :  { %1589 = vmatmul.mubr.msk.f32.gmra.mrb[42].mxu0 %vm777_vm2, %v702_v2 }
 0x178   :  { %1601 = vmatmul.mubr.msk.f32.gmra.mrb[42].mxu1 %vm777_vm2, %v702_v2  ;;  %938 = vmatprep.mubr.f32.mxu0 %v2085_v4 }
 0x179   :  { %1075 = vmatprep.mubr.f32.mxu1 %v2085_v4 }
 0x17b   :  { %1590 = vmatmul.mubr.msk.f32.gmra.mrb[44].mxu0 %vm777_vm2, %v703_v3 }
 0x17c   :  { %1602 = vmatmul.mubr.msk.f32.gmra.mrb[44].mxu1 %vm777_vm2, %v703_v3  ;;  %944 = vmatprep.mubr.f32.mxu0 %v2085_v4 }
 0x17d   :  { %1081 = vmatprep.mubr.f32.mxu1 %v2085_v4 }
 0x17f   :  { %1591 = vmatmul.mubr.msk.f32.gmra.mrb[46].mxu0 %vm777_vm2, %v704_v8 }
 0x180   :  { %1603 = vmatmul.mubr.msk.f32.gmra.mrb[46].mxu1 %vm777_vm2, %v704_v8  ;;  %1418 = vmatprep.mubr.f32.mxu0 %v2085_v4 }
 0x181   :  { %1489 = vmatprep.mubr.f32.mxu1 %v2085_v4 }
 0x226   :  { %v880_v23 = vpop.f32.mrb[24].mxu0 }
 0x227   :  { %v881_v12 = vadd.f32 %v880_v23, %v720_v11  ;;  %v1017_v14 = vpop.f32.mrb[24].mxu1  ;;  %v882_v18 = vpop.f32.mrb[25].mxu0 }
 0x228   :  { %v1018_v22 = vadd.f32 %v1017_v14, %v720_v11  ;;  %v883_v55 = vadd.f32 %v882_v18, %v720_v11  ;;  %v1019_v57 = vpop.f32.mrb[25].mxu1 }
 0x229   :  { %v1604_v29 = vmul.f32 -1.442695, %v881_v12  ;;  %v1020_v33 = vadd.f32 %v1019_v57, %v720_v11 }
 0x22a   :  { %v1606_v41 = vmul.f32 -1.442695, %v1018_v22  ;;  %v1605_v16 = vmul.f32 -1.442695, %v883_v55  ;;  %v886_v1 = vpop.f32.mrb[26].mxu0 }
 0x22b   :  { %1869 = vpow2.f32 %v1604_v29  ;;  %v1607_v45 = vmul.f32 -1.442695, %v1020_v33  ;;  %v887_v13 = vadd.f32 %v886_v1, %v725_v39  ;;  %v1023_v31 = vpop.f32.mrb[26].mxu1  ;;  %v888_v26 = vpop.f32.mrb[27].mxu0 }
 0x22c   :  { %1871 = vpow2.f32 %v1606_v41  ;;  %v1024_v4 = vadd.f32 %v1023_v31, %v725_v39  ;;  %v889_v27 = vadd.f32 %v888_v26, %v725_v39  ;;  %v1025_v35 = vpop.f32.mrb[27].mxu1  ;;  %v740_v33 = vpop.permute.xlu0 %739 }
 0x22d   :  { %1873 = vpow2.f32 %v1605_v16  ;;  %v1608_v46 = vmul.f32 -1.442695, %v887_v13  ;;  %v1026_v17 = vadd.f32 %v1025_v35, %v725_v39  ;;  %v2542_v26 = vpop.permute.xlu1 %764 }
 0x22e   :  { %1875 = vpow2.f32 %v1607_v45  ;;  %v1610_v30 = vmul.f32 -1.442695, %v1024_v4  ;;  %v1609_v25 = vmul.f32 -1.442695, %v889_v27  ;;  %v892_v34 = vpop.f32.mrb[28].mxu0 }
 0x22f   :  { %1877 = vpow2.f32 %v1608_v46  ;;  %v1611_v38 = vmul.f32 -1.442695, %v1026_v17  ;;  %v893_v40 = vadd.f32 %v892_v34, %v730_v21  ;;  %v1029_v61 = vpop.f32.mrb[28].mxu1  ;;  %v894_v49 = vpop.f32.mrb[29].mxu0 }
 0x230   :  { %1879 = vpow2.f32 %v1610_v30  ;;  %v1030_v51 = vadd.f32 %v1029_v61, %v730_v21  ;;  %v895_v37 = vadd.f32 %v894_v49, %v730_v21  ;;  %v1031_v42 = vpop.f32.mrb[29].mxu1  ;;  %v2552_v61 = vpop.permute.xlu0 %769 }
 0x231   :  { %1881 = vpow2.f32 %v1609_v25  ;;  %v1612_v43 = vmul.f32 -1.442695, %v893_v40  ;;  %v1032_v62 = vadd.f32 %v1031_v42, %v730_v21 }
 0x232   :  { %1883 = vpow2.f32 %v1611_v38  ;;  %v1614_v44 = vmul.f32 -1.442695, %v1030_v51  ;;  %v898_v19 = vpop.f32.mrb[30].mxu0  ;;  %v1613_v20 = vmul.f32 -1.442695, %v895_v37 }
 0x233   :  { %1885 = vpow2.f32 %v1612_v43  ;;  %v899_v47 = vadd.f32 %v898_v19, %v735_v28  ;;  %v1035_v6 = vpop.f32.mrb[30].mxu1  ;;  %v900_v0 = vpop.f32.mrb[31].mxu0  ;;  %v1615_v5 = vmul.f32 -1.442695, %v1032_v62 }
 0x234   :  { %1887 = vpow2.f32 %v1614_v44  ;;  %v1037_v56 = vpop.f32.mrb[31].mxu1  ;;  %v1036_v57 = vadd.f32 %v1035_v6, %v735_v28  ;;  %v901_v41 = vadd.f32 %v900_v0, %v735_v28  ;;  %v745_v62 = vpop.permute.xlu1 %744 }
 0x235   :  { %v1870_v53 = vpop.eup %1869  ;;  %v1616_v54 = vmul.f32 -1.442695, %v899_v47  ;;  %1889 = vpow2.f32 %v1613_v20  ;;  %v1038_v45 = vadd.f32 %v1037_v56, %v735_v28 }
 0x236   :  { %v1872_v60 = vpop.eup %1871  ;;  %v904_v50 = vpop.f32.mrb[32].mxu0  ;;  %v1136_v24 = vadd.f32 1.0, %v1870_v53  ;;  %1891 = vpow2.f32 %v1615_v5  ;;  %v1618_v35 = vmul.f32 -1.442695, %v1036_v57  ;;  %v1617_v17 = vmul.f32 -1.442695, %v901_v41 }
 0x237   :  { %v1874_v10 = vpop.eup %1873  ;;  %v1041_v63 = vpop.f32.mrb[32].mxu1  ;;  %v1138_v32 = vadd.f32 1.0, %v1872_v60  ;;  %1893 = vpow2.f32 %v1616_v54  ;;  %v1619_v25 = vmul.f32 -1.442695, %v1038_v45  ;;  %v905_v49 = vadd.f32 %v904_v50, %v740_v33 }
 0x238   :  { %v2532_v48 = vpop.f32.mrb[33].mxu0  ;;  %v1876_v52 = vpop.eup %1875  ;;  %v1137_v15 = vadd.f32 1.0, %v1874_v10  ;;  %1895 = vrcp.f32 %v1136_v24  ;;  %v1042_v42 = vadd.f32 %v1041_v63, %v740_v33 }
 0x239   :  { %v1043_v58 = vpop.f32.mrb[33].mxu1  ;;  %v1878_v7 = vpop.eup %1877  ;;  %v1139_v36 = vadd.f32 1.0, %v1876_v52  ;;  %1897 = vrcp.f32 %v1138_v32  ;;  %v907_v28 = vadd.f32 %v2532_v48, %v740_v33 }
 0x23a   :  { %v1880_v59 = vpop.eup %1879  ;;  %v910_v2 = vpop.f32.mrb[34].mxu0  ;;  %v1140_v8 = vadd.f32 1.0, %v1878_v7  ;;  %1899 = vrcp.f32 %v1137_v15  ;;  %v1044_v47 = vadd.f32 %v1043_v58, %v740_v33 }
 0x23b   :  { %v1882_v3 = vpop.eup %1881  ;;  %v1047_v11 = vpop.f32.mrb[34].mxu1  ;;  %v1142_v14 = vadd.f32 1.0, %v1880_v59  ;;  %1901 = vrcp.f32 %v1139_v36  ;;  %v911_v56 = vadd.f32 %v910_v2, %v745_v62 }
 0x23c   :  { %v2536_v23 = vpop.f32.mrb[35].mxu0  ;;  %v1884_v12 = vpop.eup %1883  ;;  %v1141_v55 = vadd.f32 1.0, %v1882_v3  ;;  %1903 = vrcp.f32 %v1140_v8  ;;  %v1048_v60 = vadd.f32 %v1047_v11, %v745_v62 }
 0x23d   :  { %v2538_v18 = vpop.f32.mrb[35].mxu1  ;;  %v1886_v22 = vpop.eup %1885  ;;  %v1143_v39 = vadd.f32 1.0, %v1884_v12  ;;  %1905 = vrcp.f32 %v1142_v14  ;;  %v913_v10 = vadd.f32 %v2536_v23, %v745_v62 }
 0x23e   :  { %v1888_v29 = vpop.eup %1887  ;;  %v916_v16 = vpop.f32.mrb[36].mxu0  ;;  %v1144_v1 = vadd.f32 1.0, %v1886_v22  ;;  %1907 = vrcp.f32 %v1141_v55  ;;  %v1050_v48 = vadd.f32 %v2538_v18, %v745_v62 }
 0x23f   :  { %v1053_v13 = vpop.f32.mrb[36].mxu1  ;;  %v2540_v31 = vpop.f32.mrb[37].mxu0  ;;  %v1146_v4 = vadd.f32 1.0, %v1888_v29  ;;  %1909 = vrcp.f32 %v1143_v39 }
 0x240   :  { %v2544_v27 = vpop.f32.mrb[37].mxu1  ;;  %v1890_v46 = vpop.eup %1889  ;;  %1911 = vrcp.f32 %v1144_v1 }
 0x241   :  { %v1892_v30 = vpop.eup %1891  ;;  %1913 = vrcp.f32 %v1146_v4  ;;  %v2565_v50 = vpop.permute.xlu0 %749  ;;  %v1145_v11 = vadd.f32 1.0, %v1890_v46 }
 0x242   :  { %v2546_v21 = vpop.f32.mrb[38].mxu0  ;;  %v1894_v40 = vpop.eup %1893  ;;  %1915 = vpow2.f32 %v1618_v35  ;;  %v917_v7 = vadd.f32 %v916_v16, %v2565_v50  ;;  %v1054_v36 = vadd.f32 %v1053_v13, %v2565_v50  ;;  %v1147_v18 = vadd.f32 1.0, %v1892_v30 }
 0x243   :  { %v2548_v34 = vpop.f32.mrb[38].mxu1  ;;  %v2550_v38 = vpop.f32.mrb[39].mxu0  ;;  %1917 = vpow2.f32 %v1617_v17  ;;  %v1148_v57 = vadd.f32 1.0, %v1894_v40 }
 0x244   :  { %v2554_v51 = vpop.f32.mrb[39].mxu1  ;;  %v1896_v37 = vpop.eup %1895  ;;  %1919 = vpow2.f32 %v1619_v25 }
 0x245   :  { %v1898_v43 = vpop.eup %1897  ;;  %1921 = vtanh.f32 %v905_v49  ;;  %v2595_v49 = vpop.permute.xlu1 %774 }
 0x246   :  { %v2557_v44 = vpop.f32.mrb[40].mxu0  ;;  %v1900_v19 = vpop.eup %1899  ;;  %1923 = vtanh.f32 %v1042_v42 }
 0x247   :  { %v2559_v6 = vpop.f32.mrb[40].mxu1  ;;  %v2561_v0 = vpop.f32.mrb[41].mxu0  ;;  %1925 = vtanh.f32 %v907_v28 }
 0x248   :  { %v1902_v20 = vpop.eup %1901  ;;  %v2563_v53 = vpop.f32.mrb[41].mxu1  ;;  %1927 = vtanh.f32 %v1044_v47 }
 0x249   :  { %v1904_v5 = vpop.eup %1903  ;;  %1929 = vtanh.f32 %v911_v56 }
 0x24a   :  { %v1906_v54 = vpop.eup %1905  ;;  %v2568_v24 = vpop.f32.mrb[42].mxu0  ;;  %1931 = vtanh.f32 %v1048_v60 }
 0x24b   :  { %v1908_v63 = vpop.eup %1907  ;;  %v2571_v52 = vpop.f32.mrb[42].mxu1  ;;  %1933 = vtanh.f32 %v913_v10 }
 0x24c   :  { %v2573_v32 = vpop.f32.mrb[43].mxu0  ;;  %v1910_v58 = vpop.eup %1909  ;;  %1935 = vtanh.f32 %v1050_v48 }
 0x24d   :  { %v2576_v15 = vpop.f32.mrb[43].mxu1  ;;  %v1912_v59 = vpop.eup %1911  ;;  %1937 = vtanh.f32 %v917_v7  ;;  %v919_v7 = vadd.f32 %v2540_v31, %v2565_v50  ;;  %v1066_v31 = vadd.f32 %v2559_v6, %v2534_v9  ;;  %v935_v6 = vadd.f32 %v2568_v24, %v2542_v26 }
 0x24e   :  { %v1914_v2 = vpop.eup %1913  ;;  %v2579_v3 = vpop.f32.mrb[44].mxu0  ;;  %1939 = vtanh.f32 %v1054_v36 }
 0x24f   :  { %v1916_v8 = vpop.eup %1915  ;;  %v2581_v23 = vpop.f32.mrb[44].mxu1  ;;  %1941 = vrcp.f32 %v1145_v11  ;;  %v1624_v24 = vmul.f32 -1.442695, %v935_v6 }
 0x250   :  { %v2583_v12 = vpop.f32.mrb[45].mxu0  ;;  %v1918_v14 = vpop.eup %1917  ;;  %v1150_v33 = vadd.f32 1.0, %v1916_v8  ;;  %1943 = vrcp.f32 %v1147_v18 }
 0x251   :  { %v2585_v22 = vpop.f32.mrb[45].mxu1  ;;  %v1920_v55 = vpop.eup %1919  ;;  %v1149_v16 = vadd.f32 1.0, %v1918_v14  ;;  %1945 = vrcp.f32 %v1148_v57 }
 0x252   :  { %v1922_v29 = vpop.eup %1921  ;;  %v2587_v39 = vpop.f32.mrb[46].mxu0  ;;  %v1151_v35 = vadd.f32 1.0, %v1920_v55  ;;  %1947 = vrcp.f32 %v1150_v33  ;;  %v1622_v55 = vmul.f32 -1.442695, %v1066_v31 }
 0x253   :  { %v1924_v41 = vpop.eup %1923  ;;  %v1296_v1 = vmul.f32 %v1922_v29, %v1896_v37  ;;  %v2589_v45 = vpop.f32.mrb[46].mxu1  ;;  %1949 = vrcp.f32 %v1149_v16 }
 0x254   :  { %v2591_v13 = vpop.f32.mrb[47].mxu0  ;;  %v1926_v4 = vpop.eup %1925  ;;  %v1298_v46 = vmul.f32 %v1924_v41, %v1898_v43  ;;  %1951 = vrcp.f32 %v1151_v35 }
 0x255   :  { %v2593_v17 = vpop.f32.mrb[47].mxu1  ;;  %v1928_v30 = vpop.eup %1927  ;;  %v1297_v25 = vmul.f32 %v1926_v4, %v1900_v19  ;;  %1953 = vtanh.f32 %v1296_v1 }
 0x256   :  { %v1930_v40 = vpop.eup %1929  ;;  %v1299_v42 = vmul.f32 %v1928_v30, %v1902_v20  ;;  %1955 = vtanh.f32 %v1298_v46  ;;  %v755_v36 = vpop.permute.xlu1 %754 }
 0x257   :  { %v1932_v62 = vpop.eup %1931  ;;  %v1300_v37 = vmul.f32 %v1930_v40, %v1904_v5  ;;  %1957 = vtanh.f32 %v1297_v25  ;;  %v1056_v5 = vadd.f32 %v2544_v27, %v2565_v50  ;;  %v931_v27 = vadd.f32 %v2561_v0, %v2534_v9 }
 0x258   :  { %v1934_v28 = vpop.eup %1933  ;;  %v1302_v47 = vmul.f32 %v1932_v62, %v1906_v54  ;;  %1959 = vtanh.f32 %v1299_v42  ;;  %v923_v54 = vadd.f32 %v2546_v21, %v755_v36  ;;  %v1062_v21 = vadd.f32 %v2554_v51, %v755_v36 }
 0x259   :  { %v1936_v56 = vpop.eup %1935  ;;  %v1301_v60 = vmul.f32 %v1934_v28, %v1908_v63  ;;  %1961 = vtanh.f32 %v1300_v37  ;;  %v929_v63 = vadd.f32 %v2557_v44, %v2534_v9  ;;  %v1068_v44 = vadd.f32 %v2563_v53, %v2534_v9 }
 0x25a   :  { %v1938_v43 = vpop.eup %1937  ;;  %v1303_v10 = vmul.f32 %v1936_v56, %v1910_v58  ;;  %1963 = vtanh.f32 %v1302_v47  ;;  %v1621_v57 = vmul.f32 -1.442695, %v931_v27  ;;  %v937_v51 = vadd.f32 %v2573_v32, %v2542_v26 }
 0x25b   :  { %v1940_v48 = vpop.eup %1939  ;;  %v1304_v19 = vmul.f32 %v1938_v43, %v1912_v59  ;;  %v1060_v59 = vadd.f32 %v2548_v34, %v755_v36  ;;  %1965 = vtanh.f32 %v919_v7  ;;  %v1620_v34 = vmul.f32 -1.442695, %v929_v63 }
 0x25c   :  { %v1306_v20 = vmul.f32 %v1940_v48, %v1914_v2  ;;  %v1942_v8 = vpop.eup %1941  ;;  %v925_v2 = vadd.f32 %v2550_v38, %v755_v36  ;;  %1967 = vtanh.f32 %v1056_v5  ;;  %v1072_v38 = vadd.f32 %v2571_v52, %v2542_v26 }
 0x25d   :  { %v1944_v58 = vpop.eup %1943  ;;  %1969 = vtanh.f32 %v923_v54  ;;  %v1623_v53 = vmul.f32 -1.442695, %v1068_v44  ;;  %v1625_v16 = vmul.f32 -1.442695, %v937_v51  ;;  %v1074_v36 = vadd.f32 %v2576_v15, %v2542_v26 }
 0x25e   :  { %v1946_v11 = vpop.eup %1945  ;;  %1971 = vtanh.f32 %v1060_v59  ;;  %v1626_v41 = vmul.f32 -1.442695, %v1072_v38  ;;  %v1078_v54 = vadd.f32 %v2581_v23, %v2552_v61  ;;  %v943_v59 = vadd.f32 %v2583_v12, %v2552_v61 }
 0x25f   :  { %v1948_v50 = vpop.eup %1947  ;;  %1973 = vtanh.f32 %v925_v2  ;;  %v1627_v15 = vmul.f32 -1.442695, %v1074_v36  ;;  %v947_v23 = vadd.f32 %v2587_v39, %v2595_v49  ;;  %v1084_v12 = vadd.f32 %v2589_v45, %v2595_v49 }
 0x260   :  { %v1950_v14 = vpop.eup %1949  ;;  %1975 = vtanh.f32 %v1062_v21  ;;  %v1630_v21 = vmul.f32 -1.442695, %v1078_v54  ;;  %v1086_v39 = vadd.f32 %v2593_v17, %v2595_v49 }
 0x261   :  { %v1952_v18 = vpop.eup %1951  ;;  %1977 = vpow2.f32 %v1620_v34  ;;  %v1634_v45 = vmul.f32 -1.442695, %v1084_v12 }
 0x262   :  { %v2617_v0 = vpop.eup %1953  ;;  %1979 = vpow2.f32 %v1622_v55 }
 0x263   :  { %v2621_v9 = vpop.eup %1955  ;;  %1981 = vpow2.f32 %v1621_v57 }
 0x264   :  { %v2623_v29 = vpop.eup %1957  ;;  %1983 = vpow2.f32 %v1623_v53 }
 0x265   :  { %v2625_v33 = vpop.eup %1959  ;;  %1985 = vpow2.f32 %v1624_v24 }
 0x266   :  { %v2627_v52 = vpop.eup %1961  ;;  %1987 = vpow2.f32 %v1626_v41 }
 0x267   :  { %v2629_v1 = vpop.eup %1963  ;;  %1989 = vpow2.f32 %v1625_v16 }
 0x268   :  { %v1966_v32 = vpop.eup %1965  ;;  %1991 = vtanh.f32 %v1301_v60 }
 0x269   :  { %v1968_v4 = vpop.eup %1967  ;;  %v1305_v35 = vmul.f32 %v1966_v32, %v1942_v8  ;;  %1993 = vtanh.f32 %v1303_v10 }
 0x26a   :  { %v1970_v46 = vpop.eup %1969  ;;  %v1307_v30 = vmul.f32 %v1968_v4, %v1944_v58  ;;  %1995 = vtanh.f32 %v1304_v19  ;;  %v941_v19 = vadd.f32 %v2579_v3, %v2552_v61 }
 0x26b   :  { %v1972_v25 = vpop.eup %1971  ;;  %v2631_v40 = vmul.f32 %v1970_v46, %v1946_v11  ;;  %1997 = vtanh.f32 %v1306_v20  ;;  %v1080_v11 = vadd.f32 %v2585_v22, %v2552_v61  ;;  %v949_v61 = vadd.f32 %v2591_v13, %v2595_v49 }
 0x26c   :  { %v1974_v42 = vpop.eup %1973  ;;  %v2633_v62 = vmul.f32 %v1972_v25, %v1948_v50  ;;  %1999 = vtanh.f32 %v1305_v35  ;;  %v1628_v27 = vmul.f32 -1.442695, %v941_v19  ;;  %v1635_v13 = vmul.f32 -1.442695, %v1086_v39 }
 0x26d   :  { %v1976_v37 = vpop.eup %1975  ;;  %v2635_v28 = vmul.f32 %v1974_v42, %v1950_v14  ;;  %2001 = vtanh.f32 %v1307_v30  ;;  %v1629_v14 = vmul.f32 -1.442695, %v943_v59  ;;  %v1631_v34 = vmul.f32 -1.442695, %v1080_v11 }
 0x26e   :  { %v1978_v47 = vpop.eup %1977  ;;  %v2637_v56 = vmul.f32 %v1976_v37, %v1952_v18  ;;  %v1632_v18 = vmul.f32 -1.442695, %v947_v23  ;;  %v1633_v57 = vmul.f32 -1.442695, %v949_v61 }
 0x26f   :  { %v1980_v43 = vpop.eup %1979  ;;  %v1248_v48 = vadd.f32 1.0, %v1978_v47 }
 0x270   :  { %v1982_v7 = vpop.eup %1981  ;;  %v1250_v60 = vadd.f32 1.0, %v1980_v43 }
 0x271   :  { %v1984_v10 = vpop.eup %1983  ;;  %2003 = vrcp.f32 %v1248_v48  ;;  %v1249_v5 = vadd.f32 1.0, %v1982_v7 }
 0x272   :  { %v1986_v8 = vpop.eup %1985  ;;  %2005 = vrcp.f32 %v1250_v60  ;;  %v1251_v20 = vadd.f32 1.0, %v1984_v10 }
 0x273   :  { %v1988_v63 = vpop.eup %1987  ;;  %2007 = vrcp.f32 %v1249_v5  ;;  %v1252_v58 = vadd.f32 1.0, %v1986_v8 }
 0x274   :  { %v1990_v31 = vpop.eup %1989  ;;  %2009 = vrcp.f32 %v1251_v20  ;;  %v1254_v26 = vadd.f32 1.0, %v1988_v63 }
 0x275   :  { %v1992_v3 = vpop.eup %1991  ;;  %2011 = vrcp.f32 %v1252_v58  ;;  %v1253_v2 = vadd.f32 1.0, %v1990_v31 }
 0x276   :  { %v2651_v50 = vpop.eup %1993  ;;  %2013 = vrcp.f32 %v1254_v26 }
 0x277   :  { %v2655_v44 = vpop.eup %1995  ;;  %2015 = vrcp.f32 %v1253_v2 }
 0x278   :  { %v2659_v22 = vpop.eup %1997  ;;  %2017 = vpow2.f32 %v1627_v15 }
 0x279   :  { %v2663_v6 = vpop.eup %1999  ;;  %2019 = vpow2.f32 %v1628_v27 }
 0x27a   :  { %v2665_v55 = vpop.eup %2001  ;;  %2021 = vpow2.f32 %v1630_v21 }
 0x27b   :  { %v2004_v38 = vpop.eup %2003  ;;  %2023 = vpow2.f32 %v1629_v14 }
 0x27c   :  { %v2006_v51 = vpop.eup %2005  ;;  %2025 = vpow2.f32 %v1631_v34  ;;  %v1328_v53 = vmul.f32 %v2004_v38, %v2617_v0 }
 0x27d   :  { %v2008_v24 = vpop.eup %2007  ;;  %2027 = vpow2.f32 %v1632_v18  ;;  %v2669_v17 = vmul.f32 %v2006_v51, %v2621_v9 }
 0x27e   :  { %v2010_v49 = vpop.eup %2009  ;;  %2029 = vpow2.f32 %v1634_v45  ;;  %v1329_v41 = vmul.f32 %v2008_v24, %v2623_v29 }
 0x27f   :  { %v2012_v16 = vpop.eup %2011  ;;  %2031 = vpow2.f32 %v1633_v57  ;;  %v1331_v32 = vmul.f32 %v2010_v49, %v2625_v33 }
 0x280   :  { %v2014_v4 = vpop.eup %2013  ;;  %2033 = vpow2.f32 %v1635_v13  ;;  %v1332_v35 = vmul.f32 %v2012_v16, %v2627_v52 }
 0x281   :  { %v2016_v46 = vpop.eup %2015  ;;  %2035 = vtanh.f32 %v2631_v40  ;;  %v1334_v0 = vmul.f32 %v2014_v4, %v2629_v1 }
 0x282   :  { %v2018_v30 = vpop.eup %2017  ;;  %2037 = vtanh.f32 %v2633_v62  ;;  %v1333_v9 = vmul.f32 %v2016_v46, %v1992_v3  ;;  %v1656_v25 = vpack.c.bf16 %v1332_v35, %v1328_v53 }
 0x283   :  { %v2020_v42 = vpop.eup %2019  ;;  %2039 = vtanh.f32 %v2635_v28  ;;  %v1255_v29 = vadd.f32 1.0, %v2018_v30  ;;  %v1664_v33 = vpack.c.bf16 %v1334_v0, %v2669_v17 }
 0x284   :  { %v2022_v37 = vpop.eup %2021  ;;  %2041 = vtanh.f32 %v2637_v56  ;;  %v1256_v52 = vadd.f32 1.0, %v2020_v42  ;;  %v1654_v47 = vpack.c.bf16 %v1333_v9, %v1329_v41 }
 0x285   :  { %v2024_v43 = vpop.eup %2023  ;;  %2043 = vrcp.f32 %v1255_v29  ;;  %v1258_v40 = vadd.f32 1.0, %v2022_v37 }
 0x286   :  { %v2026_v1 = vpop.eup %2025  ;;  %2045 = vrcp.f32 %v1256_v52  ;;  %v1257_v48 = vadd.f32 1.0, %v2024_v43  ;;  %1655 = vmatprep.subr.bf16.mxu0 %v1654_v47 }
 0x287   :  { %v2028_v62 = vpop.eup %2027  ;;  %2047 = vrcp.f32 %v1258_v40  ;;  %v1259_v7 = vadd.f32 1.0, %v2026_v1  ;;  %1657 = vmatpush1.bf16.msra.mxu0 %v1656_v25 }
 0x288   :  { %v2030_v28 = vpop.eup %2029  ;;  %2049 = vrcp.f32 %v1257_v48  ;;  %v1260_v60 = vadd.f32 1.0, %v2028_v62 }
 0x289   :  { %v2032_v36 = vpop.eup %2031  ;;  %2051 = vrcp.f32 %v1259_v7  ;;  %v1262_v10 = vadd.f32 1.0, %v2030_v28 }
 0x28a   :  { %v2034_v56 = vpop.eup %2033  ;;  %2053 = vrcp.f32 %v1260_v60  ;;  %v1261_v5 = vadd.f32 1.0, %v2032_v36 }
 0x28b   :  { %v2036_v19 = vpop.eup %2035  ;;  %2055 = vrcp.f32 %v1262_v10  ;;  %v1263_v8 = vadd.f32 1.0, %v2034_v56 }
 0x28c   :  { %v2038_v20 = vpop.eup %2037  ;;  %2057 = vrcp.f32 %v1261_v5 }
 0x28d   :  { %v2040_v54 = vpop.eup %2039  ;;  %2059 = vrcp.f32 %v1263_v8 }
 0x28e   :  { %v2042_v63 = vpop.eup %2041 }
 0x28f   :  { %v2044_v58 = vpop.eup %2043 }
 0x290   :  { %v2046_v59 = vpop.eup %2045  ;;  %v1335_v31 = vmul.f32 %v2044_v58, %v2651_v50 }
 0x291   :  { %v2048_v26 = vpop.eup %2047  ;;  %v1336_v15 = vmul.f32 %v2046_v59, %v2655_v44 }
 0x292   :  { %v2050_v11 = vpop.eup %2049  ;;  %v1662_v3 = vpack.c.bf16 %v1335_v31, %v1331_v32  ;;  %v1338_v2 = vmul.f32 %v2048_v26, %v2659_v22  ;;  %v1344_v22 = vld [vmem:[%s2707_s5] sm:$0x7]  ;;  %s2061_s5 = scalar_lea.vmem %s1513_s1, 256 }
 0x293   :  { %v2052_v27 = vpop.eup %2051  ;;  %v1337_v23 = vmul.f32 %v2050_v11, %v2663_v6  ;;  %v1349_v6 = vpop.permute.xlu0 %1348  ;;  %p2062_p0 = scmp.ne.s32.totalorder %s1513_s1, %s2061_s5  ;;  %p2067_p2 = scmp.lt.s32.totalorder %s2061_s5, %s2061_s5 }
 0x294   :  { %v2054_v21 = vpop.eup %2053  ;;  %1663 = vmatprep.subr.bf16.mxu1 %v1662_v3  ;;  %v1339_v12 = vmul.f32 %v2052_v27, %v2665_v55 }
 0x295   :  { %v2056_v14 = vpop.eup %2055  ;;  %1665 = vmatpush1.bf16.msra.mxu1 %v1664_v33  ;;  %v1340_v61 = vmul.f32 %v2054_v21, %v2036_v19  ;;  %p2068_p3 = por %p2067_p2, %p2066_p1 }
 0x296   :  { %v2058_v34 = vpop.eup %2057  ;;  %v1342_v39 = vmul.f32 %v2056_v14, %v2038_v20 }
 0x297   :  { %v2060_v50 = vpop.eup %2059  ;;  %v1341_v18 = vmul.f32 %v2058_v34, %v2040_v54  ;;  %v1660_v45 = vpack.c.bf16 %v1340_v61, %v1336_v15  ;;  %p2069_p4 = pnand %p2068_p3, %p2062_p0 }
 0x298   :  { %v1343_v44 = vmul.f32 %v2060_v50, %v2042_v63  ;;  %v1668_v38 = vpack.c.bf16 %v1342_v39, %v1338_v2 }
 0x299   :  { %v1658_v57 = vpack.c.bf16 %v1341_v18, %v1337_v23 }
 0x29a   :  { %v1666_v51 = vpack.c.bf16 %v1343_v44, %v1339_v12 }
 0x29b   :  { %1659 = vmatprep.subr.bf16.mxu0 %v1658_v57 }
 0x29c   :  { %1667 = vmatprep.subr.bf16.mxu1 %v1666_v51  ;;  %1661 = vmatpush1.bf16.msra.mxu0 %v1660_v45 }
 0x29d   :  { %1669 = vmatpush1.bf16.msra.mxu1 %v1668_v38 }
 0x29f   :  { %1636 = vmatmul.mubr.msk.f32.vlgmr.msra.gmra.mrb[48].mxu0 %vm777_vm2, %v1344_v22 }
 0x2a0   :  { %1637 = vmatmul.mubr.msk.f32.vlgmr.msra.gmra.mrb[48].mxu1 %vm777_vm2, %v1344_v22 }
 0x372   :  { %v1420_v55 = vpop.f32.mrb[48].mxu0 }
 0x373   :  { %v1421_v13 = vadd.f32 %v1420_v55, %v1349_v6  ;;  %v1491_v53 = vpop.f32.mrb[48].mxu1  ;;  %v1422_v24 = vpop.f32.mrb[49].mxu0 }
 0x374   :  { %v1492_v17 = vadd.f32 %v1491_v53, %v1349_v6  ;;  %v1423_v49 = vadd.f32 %v1422_v24, %v1349_v6  ;;  %v1493_v41 = vpop.f32.mrb[49].mxu1 }
 0x375   :  { %v1494_v16 = vadd.f32 %v1493_v41, %v1349_v6 }
 0x376   :  { %v1500_v32 = vcombine.low %v1421_v13, %v1423_v49 }
 0x377   :  { %v1501_v4 = vcombine.low %v1492_v17, %v1494_v16 }
 0x378   :  { %1504 = vst [vmem:[#allocation2] sm:$0x77] %v1500_v32 }
 0x379   :  { %1505 = vst [vmem:[#allocation2 + $0x8] sm:$0x77] %v1501_v4 }
 0x37a   :  { %2072 = shalt.err (!%p2069_p4)
}
 0x37b   :  { %s2073_s6 = scalar_lea.hbm %s2709_s7, 256 }
 0x37c   :  { %p2074_p5 = scmp.ne.s32.totalorder %s2709_s7, %s2073_s6  ;;  %p2077_p6 = scmp.lt.u32.totalorder %s2073_s6, %s2709_s7 }
 0x37e   :  { %p2079_p7 = pnand %p2077_p6, %p2074_p5 }
 0x380   :  { %2082 = shalt.err (!%p2079_p7)
}
 0x381   :  { %1515 = dma.vmem_to_hbm [thread:$0]  %s1513_s1, 256, %s2709_s7, [#allocation3]  }
 0x382   :  { %2083 = dma.done.wait [#allocation3], 256  }
 0x383   :  { %2084 = vsyncadd [#allocation3], 4294967040 }
 0x384   :  { %1519 = vsyncpa [#allocation3], 1 }

</bundles_post_ra>
